<compile_context>
chip_gen: v7x
topology: tpu7x:2x2x1
jax: 0.10.0
libtpu: 0.0.40
codegen_flags: <defaults>
</compile_context>

<pallas_src>
import functools
import math

import jax
import jax.numpy as jnp
import numpy as np
from jax.experimental import pallas as pl
from jax.experimental.pallas import tpu as pltpu


def _layernorm(v, g, b, eps=1e-5):
    mu = jnp.mean(v, axis=-1, keepdims=True)
    var = jnp.mean(jnp.square(v - mu), axis=-1, keepdims=True)
    return (v - mu) * jax.lax.rsqrt(var + eps) * g + b


# --------------------------------------------------------------------------- kernel
def fusion_block_kernel(x_ref, ln1g_ref, ln1b_ref, wq_ref, bq_ref,
                        wkv_ref, bkv_ref, seg_ref, segt_ref, wo_ref, bo_ref,
                        ln2g_ref, ln2b_ref, w1_ref, b1_ref, w2_ref, b2_ref,
                        lnfg_ref, lnfb_ref, out_ref,
                        *, n_heads, mxu_dtype, exact_softmax):
    x = x_ref[...].astype(jnp.float32)                         # (Bt, S, E)
    Bt, S, E = x.shape
    E2 = 2 * E
    H = n_heads

    def mm(a, w_ref):
        # cast activations at the MXU boundary; accumulate in f32.
        return jnp.dot(a.astype(mxu_dtype), w_ref[...],
                       preferred_element_type=jnp.float32)

    # ---- x + MHA(ln_1(x)); only the cls row is needed downstream (cls pooling) ----
    h = _layernorm(x, ln1g_ref[...], ln1b_ref[...])            # (Bt, S, E) f32
    hf = h.reshape(Bt * S, E)

    kv = (mm(hf, wkv_ref) + bkv_ref[...]).reshape(Bt, S, E2)   # fused [K | V], lane-dense
    q = mm(h[:, 0, :], wq_ref) + bq_ref[...]                   # (Bt, 2E); V-half lanes = 0;
                                                               # 1/sqrt(dh) pre-folded on host

    # Per-head scores via a 0/1 head-segment matmul (no lane slices, no concat):
    #   s[b, j, h] = sum_d q[b, h*dh+d] * k[b, j, h*dh+d]
    prod = (kv * q[:, None, :]).reshape(Bt * S, E2)            # V half is exactly 0
    s = mm(prod, seg_ref).reshape(Bt, S, H)                    # (Bt, S, H)
    s = s - jnp.max(s, axis=1, keepdims=True)                  # softmax over tokens
    p = jnp.exp(s)
    denom = jnp.sum(p, axis=1, keepdims=True)
    if exact_softmax:                                          # f32 check path: exact divide
        p = p / denom
    else:                                                      # fast path: EUP reciprocal
        p = p * pl.reciprocal(denom, approx=True)

    # Context: broadcast probs onto the V-half lanes, multiply-reduce over tokens.
    #   ctx[b, E + h*dh+d] = sum_j p[b, j, h] * v[b, j, h*dh+d]
    p_exp = mm(p.reshape(Bt * S, H), segt_ref).reshape(Bt, S, E2)
    ctx = jnp.sum(p_exp * kv, axis=1)                          # (Bt, 2E); K-half lanes = 0

    x_cls = x[:, 0, :] + mm(ctx, wo_ref) + bo_ref[...]         # attention residual, cls row

    # ---- epilogue in duplicated 2E-lane form so the final store is a full 128-lane vst
    #      (LN over [y, y] with duplicated gamma/beta == [LN(y), LN(y)]) ----
    xd = jnp.concatenate([x_cls, x_cls], axis=-1)              # (Bt, 2E)
    h2 = _layernorm(xd, ln2g_ref[...], ln2b_ref[...])
    ff = mm(h2, w1_ref) + b1_ref[...]                          # (Bt, 4E)
    ff = ff * jax.nn.sigmoid(1.702 * ff)                       # QuickGELU (f32 VPU/EUP)
    xd = xd + mm(ff, w2_ref) + b2_ref[...]                     # (Bt, 2E), duplicated halves
    out_ref[0, :, :] = _layernorm(xd, lnfg_ref[...], lnfb_ref[...]).astype(out_ref.dtype)


# --------------------------------------------------------------------------- block sizing
def _pick_block_b(B, S, E, *, max_block_b=None, vmem_budget_bytes=None):
    """Largest divisor of B whose per-step working set fits the VMEM budget.

    Prefers >= 2 grid steps (so the "parallel" batch axis shards across v7x's two
    TensorCores) as long as the per-step block is not degenerate.  Tune the budget per
    generation: ~16 MiB is safe everywhere (vmem_limit_bytes below raises v5e's default);
    v6e can take ~24 MiB; keep v7x (64 MiB physical) around the default.
    """
    if vmem_budget_bytes is None:
        vmem_budget_bytes = 16 << 20
    # Conservative per-example estimate: f32 temporaries (x, h, hf, kv, prod, p_exp and
    # their reshape copies) + double-buffered bf16 token block.
    per_ex = (4 * S * E + 6 * S * 2 * E + 32 * E) * 4 + 2 * 2 * S * E * 2
    cap = max(1, vmem_budget_bytes // per_ex)
    if max_block_b is not None:
        cap = min(cap, max_block_b)
    divisors = [d for d in range(1, B + 1) if B % d == 0 and d <= cap] or [1]
    best = max(divisors)
    multi = [d for d in divisors if B // d >= 2 and (d >= 8 or B <= 16)]
    if multi:
        best = max(multi)
    return best


# --------------------------------------------------------------------------- wrapper
def fusion_transformer_pallas(tokens, params, n_heads, *, mxu_dtype=jnp.bfloat16,
                              max_block_b=None, vmem_budget_bytes=None):
    """tokens: (B, S, E) with cls token already prepended.  Returns (B, E) float32."""
    B, S, E = tokens.shape
    H = n_heads
    dh = E // H
    scale = 1.0 / math.sqrt(dh)            # 0.25 for dh=16: exact even in bf16
    E2 = 2 * E
    f32 = jnp.float32

    exact = (mxu_dtype == jnp.float32)
    # Tokens are the only large HBM read: DMA them as bf16 on the fast path.
    tokens_in = tokens.astype(jnp.float32 if exact else jnp.bfloat16)

    Bt = _pick_block_b(B, S, E, max_block_b=max_block_b,
                       vmem_budget_bytes=vmem_budget_bytes)
    n_steps = B // Bt

    # ---- host-side weight prep (contraction-major; all fusions/pads done once here) ----
    head_of_e = np.arange(E) // dh
    seg = (head_of_e[:, None] == np.arange(H)[None, :]).astype(np.float32)    # (E, H)
    seg2 = np.concatenate([seg, np.zeros((E, H), np.float32)], axis=0)        # (2E, H): scores read K half
    segt2 = np.concatenate([np.zeros((H, E), np.float32), seg.T], axis=1)     # (H, 2E): probs -> V half

    zE = jnp.zeros((E, E), f32)
    wq_pad = jnp.concatenate([params['wq'] * scale, zE], axis=1)              # (E, 2E), scale folded
    bq_pad = jnp.concatenate([params['bq'] * scale, jnp.zeros((1, E), f32)], axis=1)
    wkv = jnp.concatenate([params['wk'], params['wv']], axis=1)               # (E, 2E) fused K|V
    bkv = jnp.concatenate([params['bk'], params['bv']], axis=1)               # (1, 2E)
    wo2 = jnp.concatenate([zE, params['wo']], axis=0)                         # (2E, E): reads V half of ctx
    w1_2 = jnp.concatenate([params['w1'], jnp.zeros((E, 4 * E), f32)], axis=0)  # (2E, 4E)
    w2_d = jnp.concatenate([params['w2'], params['w2']], axis=1)              # (4E, 2E): duplicated output
    b2_d = jnp.concatenate([params['b2'], params['b2']], axis=1)
    dup = lambda t: jnp.concatenate([t, t], axis=1)                           # duplicated LN gamma/beta
    cast = lambda w: jnp.asarray(w, mxu_dtype)                                # cast MXU weights once

    weight_args = [
        params['ln1_g'], params['ln1_b'],
        cast(wq_pad), bq_pad,
        cast(wkv), bkv,
        cast(seg2), cast(segt2),
        cast(wo2), params['bo'],
        dup(params['ln2_g']), dup(params['ln2_b']),
        cast(w1_2), params['b1'],
        cast(w2_d), b2_d,
        dup(params['lnf_g']), dup(params['lnf_b']),
    ]
    assert all(w.ndim == 2 for w in weight_args)

    in_specs = [pl.BlockSpec((Bt, S, E), lambda b: (b, 0, 0))]
    in_specs += [pl.BlockSpec(w.shape, lambda b: (0, 0)) for w in weight_args]
    # (Optional, v5e, if DMA shows exposed once Bt is large:
    #  in_specs[0] = pl.BlockSpec((Bt, S, E), lambda b: (b, 0, 0), pipeline_mode=pl.Buffered(3)))

    out3 = pl.pallas_call(
        functools.partial(fusion_block_kernel, n_heads=n_heads,
                          mxu_dtype=mxu_dtype, exact_softmax=exact),
        # (n_steps, Bt, 2E): each block is (1, Bt, 128) so the trailing two dims always
        # equal the array dims (legal for any Bt) and the store is a full 128-lane vst.
        out_shape=jax.ShapeDtypeStruct((n_steps, Bt, E2), jnp.float32),
        grid=(n_steps,),
        in_specs=in_specs,
        out_specs=pl.BlockSpec((1, Bt, E2), lambda b: (b, 0, 0)),
        compiler_params=pltpu.CompilerParams(
            dimension_semantics=("parallel",),       # v7x: two TCs split the batch steps
            vmem_limit_bytes=32 * 1024 * 1024),      # raise v5e's 16 MiB default scope
    )(tokens_in, *weight_args)

    # (n_steps, Bt, 2E) -> (B, 2E) is a free row-major reshape; drop the duplicated half.
    return out3.reshape(B, E2)[:, :E]


# --------------------------------------------------------------------------- params / glue
def init_params(key, embed_dim, n_heads, n_layers, mod_dims):
    """Deterministic init mirroring FusionTransformer.initialize(); weights are stored
    contraction-major (y = x @ W + b) so the kernel never transposes."""
    E = embed_dim
    attn_std = E ** (-0.5)
    proj_std = E ** (-0.5) * (2 * n_layers) ** (-0.5)
    fc_std = (2 * E) ** (-0.5)
    ks = jax.random.split(key, 12 + len(mod_dims))

    def nrm(k, shape, std):
        return std * jax.random.normal(k, shape, jnp.float32)

    p = {
        'cls_token': jax.random.normal(ks[0], (1, 1, E), jnp.float32),
        'wq': nrm(ks[1], (E, E), attn_std),   'bq': nrm(ks[2], (1, E), 0.02),
        'wk': nrm(ks[3], (E, E), attn_std),   'bk': nrm(ks[4], (1, E), 0.02),
        'wv': nrm(ks[5], (E, E), attn_std),   'bv': nrm(ks[6], (1, E), 0.02),
        'wo': nrm(ks[7], (E, E), proj_std),   'bo': nrm(ks[8], (1, E), 0.02),
        'w1': nrm(ks[9], (E, 4 * E), fc_std), 'b1': nrm(ks[10], (1, 4 * E), 0.02),
        'w2': nrm(ks[11], (4 * E, E), proj_std), 'b2': jnp.zeros((1, E), jnp.float32),
        'ln1_g': jnp.ones((1, E), jnp.float32), 'ln1_b': jnp.zeros((1, E), jnp.float32),
        'ln2_g': jnp.ones((1, E), jnp.float32), 'ln2_b': jnp.zeros((1, E), jnp.float32),
        'lnf_g': jnp.ones((1, E), jnp.float32), 'lnf_b': jnp.zeros((1, E), jnp.float32),
    }
    encs = []
    for i, d in enumerate(mod_dims):
        We = (d ** -0.5) * jax.random.normal(ks[12 + i], (d, E), jnp.float32)
        encs.append((We, jnp.zeros((E,), jnp.float32)))
    p['encoders'] = encs
    return p


def _encode_tokens(params, x_list):
    # Synthetic stand-ins for MMFusion's per-modality encoders (adapters = None):
    # each modality's features are linearly projected to E per token.  Glue, not kernel.
    toks = []
    for (We, be), xi in zip(params['encoders'], x_list):
        toks.append(jnp.einsum('bld,de->ble', xi, We) + be)
    tokens = jnp.concatenate(toks, axis=1)                    # concat over tokens
    B, _, E = tokens.shape
    cls = jnp.broadcast_to(params['cls_token'], (B, 1, E))
    return jnp.concatenate([cls, tokens], axis=1)             # prepend cls token


def mmfusion_forward(params, x_list, n_heads, *, mxu_dtype=jnp.bfloat16):
    tokens = _encode_tokens(params, x_list)
    # key_padding_mask: all-False per the reference module -> additive mask = 0 -> omitted.
    return fusion_transformer_pallas(tokens, params, n_heads, mxu_dtype=mxu_dtype)


# --------------------------------------------------------------------------- pure-JAX reference
def reference_forward(params, x_list, n_heads):
    """Standard-formulation MHA + MLP + LN reference (full sequence, f32)."""
    p = params
    x = _encode_tokens(p, x_list)                             # (B, S, E)
    B, S, E = x.shape
    H = n_heads
    dh = E // H
    scale = 1.0 / math.sqrt(dh)

    h = _layernorm(x, p['ln1_g'], p['ln1_b'])
    q = h @ p['wq'] + p['bq']
    k = h @ p['wk'] + p['bk']
    v = h @ p['wv'] + p['bv']
    qh = q.reshape(B, S, H, dh).transpose(0, 2, 1, 3)
    kh = k.reshape(B, S, H, dh).transpose(0, 2, 1, 3)
    vh = v.reshape(B, S, H, dh).transpose(0, 2, 1, 3)
    s = jnp.einsum('bhqd,bhkd->bhqk', qh, kh) * scale
    a = jax.nn.softmax(s, axis=-1)
    ctx = jnp.einsum('bhqk,bhkd->bhqd', a, vh)
    ctx = ctx.transpose(0, 2, 1, 3).reshape(B, S, E)
    x = x + (ctx @ p['wo'] + p['bo'])

    h2 = _layernorm(x, p['ln2_g'], p['ln2_b'])
    ff = h2 @ p['w1'] + p['b1']
    ff = ff * jax.nn.sigmoid(1.702 * ff)
    ff = ff @ p['w2'] + p['b2']
    x = x + ff

    return _layernorm(x, p['lnf_g'], p['lnf_b'])[:, 0, :]     # cls pooling


if __name__ == "__main__":
    B, L1, L2, D1, D2 = 2, 8, 8, 24, 10
    E, N_HEADS, N_LAYERS = 64, 4, 1

    key = jax.random.PRNGKey(0)
    k1, k2, kp = jax.random.split(key, 3)
    x1 = jax.random.normal(k1, (B, L1, D1), jnp.float32)      # modality 1 tokens
    x2 = jax.random.normal(k2, (B, L2, D2), jnp.float32)      # modality 2 tokens
    params = init_params(kp, E, N_HEADS, N_LAYERS, (D1, D2))

    ref = reference_forward(params, [x1, x2], N_HEADS)

    # f32-at-MXU path: tight correctness gate (exact softmax divide; f32 tokens).
    out_f32 = jax.block_until_ready(
        mmfusion_forward(params, [x1, x2], N_HEADS, mxu_dtype=jnp.float32))
    assert out_f32.shape == (B, E)
    np.testing.assert_allclose(np.asarray(out_f32), np.asarray(ref), rtol=5e-3, atol=5e-3)

    # bf16-at-MXU fast path (bf16 tokens at the DMA boundary): looser tolerance.
    out_bf16 = jax.block_until_ready(
        mmfusion_forward(params, [x1, x2], N_HEADS, mxu_dtype=jnp.bfloat16))
    assert out_bf16.shape == (B, E)
    np.testing.assert_allclose(np.asarray(out_bf16), np.asarray(ref), rtol=5e-2, atol=5e-2)

    print("KERNEL_OK")
</pallas_src>

<mosaic_0001>
module attributes {stable_mosaic.version = 11 : i64} {
  func.func @fusion_block_kernel(%arg0: i32, %arg1: memref<1x17x64xf32, #tpu.memory_space<vmem>>, %arg2: memref<1x64xf32, #tpu.memory_space<vmem>>, %arg3: memref<1x64xf32, #tpu.memory_space<vmem>>, %arg4: memref<64x128xf32, #tpu.memory_space<vmem>>, %arg5: memref<1x128xf32, #tpu.memory_space<vmem>>, %arg6: memref<64x128xf32, #tpu.memory_space<vmem>>, %arg7: memref<1x128xf32, #tpu.memory_space<vmem>>, %arg8: memref<128x4xf32, #tpu.memory_space<vmem>>, %arg9: memref<4x128xf32, #tpu.memory_space<vmem>>, %arg10: memref<128x64xf32, #tpu.memory_space<vmem>>, %arg11: memref<1x64xf32, #tpu.memory_space<vmem>>, %arg12: memref<1x128xf32, #tpu.memory_space<vmem>>, %arg13: memref<1x128xf32, #tpu.memory_space<vmem>>, %arg14: memref<128x256xf32, #tpu.memory_space<vmem>>, %arg15: memref<1x256xf32, #tpu.memory_space<vmem>>, %arg16: memref<256x128xf32, #tpu.memory_space<vmem>>, %arg17: memref<1x128xf32, #tpu.memory_space<vmem>>, %arg18: memref<1x128xf32, #tpu.memory_space<vmem>>, %arg19: memref<1x128xf32, #tpu.memory_space<vmem>>, %arg20: memref<1x1x128xf32, #tpu.memory_space<vmem>>) attributes {dimension_semantics = [#tpu.dimension_semantics<parallel>], iteration_bounds = array<i64: 2>, scalar_prefetch = 0 : i64, scratch_operands = 0 : i64, tpu.core_type = #tpu.core_type<tc>, window_params = [{transform_indices = @transform_0, window_bounds = array<i64: 1, 17, 64>}, {pipeline_mode = #tpu.pipeline_mode<synchronous>, transform_indices = @transform_1, window_bounds = array<i64: 1, 64>}, {pipeline_mode = #tpu.pipeline_mode<synchronous>, transform_indices = @transform_2, window_bounds = array<i64: 1, 64>}, {pipeline_mode = #tpu.pipeline_mode<synchronous>, transform_indices = @transform_3, window_bounds = array<i64: 64, 128>}, {pipeline_mode = #tpu.pipeline_mode<synchronous>, transform_indices = @transform_4, window_bounds = array<i64: 1, 128>}, {pipeline_mode = #tpu.pipeline_mode<synchronous>, transform_indices = @transform_5, window_bounds = array<i64: 64, 128>}, {pipeline_mode = #tpu.pipeline_mode<synchronous>, transform_indices = @transform_6, window_bounds = array<i64: 1, 128>}, {pipeline_mode = #tpu.pipeline_mode<synchronous>, transform_indices = @transform_7, window_bounds = array<i64: 128, 4>}, {pipeline_mode = #tpu.pipeline_mode<synchronous>, transform_indices = @transform_8, window_bounds = array<i64: 4, 128>}, {pipeline_mode = #tpu.pipeline_mode<synchronous>, transform_indices = @transform_9, window_bounds = array<i64: 128, 64>}, {pipeline_mode = #tpu.pipeline_mode<synchronous>, transform_indices = @transform_10, window_bounds = array<i64: 1, 64>}, {pipeline_mode = #tpu.pipeline_mode<synchronous>, transform_indices = @transform_11, window_bounds = array<i64: 1, 128>}, {pipeline_mode = #tpu.pipeline_mode<synchronous>, transform_indices = @transform_12, window_bounds = array<i64: 1, 128>}, {pipeline_mode = #tpu.pipeline_mode<synchronous>, transform_indices = @transform_13, window_bounds = array<i64: 128, 256>}, {pipeline_mode = #tpu.pipeline_mode<synchronous>, transform_indices = @transform_14, window_bounds = array<i64: 1, 256>}, {pipeline_mode = #tpu.pipeline_mode<synchronous>, transform_indices = @transform_15, window_bounds = array<i64: 256, 128>}, {pipeline_mode = #tpu.pipeline_mode<synchronous>, transform_indices = @transform_16, window_bounds = array<i64: 1, 128>}, {pipeline_mode = #tpu.pipeline_mode<synchronous>, transform_indices = @transform_17, window_bounds = array<i64: 1, 128>}, {pipeline_mode = #tpu.pipeline_mode<synchronous>, transform_indices = @transform_18, window_bounds = array<i64: 1, 128>}, {transform_indices = @transform_19, window_bounds = array<i64: 1, 1, 128>}]} {
    %c0 = arith.constant 0 : index
    %c0_0 = arith.constant 0 : index
    %c0_1 = arith.constant 0 : index
    %0 = vector.load %arg1[%c0, %c0_0, %c0_1] : memref<1x17x64xf32, #tpu.memory_space<vmem>>, vector<1x17x64xf32>
    %c0_2 = arith.constant 0 : index
    %c0_3 = arith.constant 0 : index
    %1 = vector.load %arg2[%c0_2, %c0_3] : memref<1x64xf32, #tpu.memory_space<vmem>>, vector<1x64xf32>
    %c0_4 = arith.constant 0 : index
    %c0_5 = arith.constant 0 : index
    %2 = vector.load %arg3[%c0_4, %c0_5] : memref<1x64xf32, #tpu.memory_space<vmem>>, vector<1x64xf32>
    %cst = arith.constant dense<0.000000e+00> : vector<1x17xf32>
    %3 = vector.multi_reduction <add>, %0, %cst [2] : vector<1x17x64xf32> to vector<1x17xf32>
    %4 = vector.shape_cast %3 : vector<1x17xf32> to vector<1x17x1xf32>
    %cst_6 = arith.constant 6.400000e+01 : f32
    %5 = vector.broadcast %cst_6 : f32 to vector<1x17x1xf32>
    %6 = arith.divf %4, %5 : vector<1x17x1xf32>
    %7 = vector.broadcast %6 : vector<1x17x1xf32> to vector<1x17x64xf32>
    %8 = arith.subf %0, %7 : vector<1x17x64xf32>
    %9 = arith.mulf %8, %8 : vector<1x17x64xf32>
    %cst_7 = arith.constant dense<0.000000e+00> : vector<1x17xf32>
    %10 = vector.multi_reduction <add>, %9, %cst_7 [2] : vector<1x17x64xf32> to vector<1x17xf32>
    %11 = vector.shape_cast %10 : vector<1x17xf32> to vector<1x17x1xf32>
    %cst_8 = arith.constant 6.400000e+01 : f32
    %12 = vector.broadcast %cst_8 : f32 to vector<1x17x1xf32>
    %13 = arith.divf %11, %12 : vector<1x17x1xf32>
    %14 = vector.broadcast %6 : vector<1x17x1xf32> to vector<1x17x64xf32>
    %15 = arith.subf %0, %14 : vector<1x17x64xf32>
    %cst_9 = arith.constant 9.99999974E-6 : f32
    %16 = vector.broadcast %cst_9 : f32 to vector<1x17x1xf32>
    %17 = arith.addf %13, %16 : vector<1x17x1xf32>
    %18 = math.rsqrt %17 : vector<1x17x1xf32>
    %19 = vector.broadcast %18 : vector<1x17x1xf32> to vector<1x17x64xf32>
    %20 = arith.mulf %15, %19 : vector<1x17x64xf32>
    %21 = vector.shape_cast %1 : vector<1x64xf32> to vector<1x1x64xf32>
    %22 = vector.broadcast %21 : vector<1x1x64xf32> to vector<1x17x64xf32>
    %23 = arith.mulf %20, %22 : vector<1x17x64xf32>
    %24 = vector.shape_cast %2 : vector<1x64xf32> to vector<1x1x64xf32>
    %25 = vector.broadcast %24 : vector<1x1x64xf32> to vector<1x17x64xf32>
    %26 = arith.addf %23, %25 : vector<1x17x64xf32>
    %27 = vector.shape_cast %26 : vector<1x17x64xf32> to vector<17x64xf32>
    %c0_10 = arith.constant 0 : index
    %c0_11 = arith.constant 0 : index
    %28 = vector.load %arg6[%c0_10, %c0_11] : memref<64x128xf32, #tpu.memory_space<vmem>>, vector<64x128xf32>
    %cst_12 = arith.constant dense<0.000000e+00> : vector<17x128xf32>
    %29 = tpu.matmul %27, %28, %cst_12 {dimension_numbers = #tpu.dot_dimension_numbers<[1], [0], [0], [1], [0, 0, 1, 1], [], []>} : vector<17x64xf32>, vector<64x128xf32>, vector<17x128xf32> -> vector<17x128xf32>
    %c0_13 = arith.constant 0 : index
    %c0_14 = arith.constant 0 : index
    %30 = vector.load %arg7[%c0_13, %c0_14] : memref<1x128xf32, #tpu.memory_space<vmem>>, vector<1x128xf32>
    %31 = vector.broadcast %30 : vector<1x128xf32> to vector<17x128xf32>
    %32 = arith.addf %29, %31 : vector<17x128xf32>
    %33 = vector.shape_cast %32 : vector<17x128xf32> to vector<1x17x128xf32>
    %34 = vector.extract_strided_slice %26 {offsets = [0, 0, 0], sizes = [1, 1, 64], strides = [1, 1, 1]} : vector<1x17x64xf32> to vector<1x1x64xf32>
    %35 = vector.shape_cast %34 : vector<1x1x64xf32> to vector<1x64xf32>
    %c0_15 = arith.constant 0 : index
    %c0_16 = arith.constant 0 : index
    %36 = vector.load %arg4[%c0_15, %c0_16] : memref<64x128xf32, #tpu.memory_space<vmem>>, vector<64x128xf32>
    %cst_17 = arith.constant dense<0.000000e+00> : vector<1x128xf32>
    %37 = tpu.matmul %35, %36, %cst_17 {dimension_numbers = #tpu.dot_dimension_numbers<[1], [0], [0], [1], [0, 0, 1, 1], [], []>} : vector<1x64xf32>, vector<64x128xf32>, vector<1x128xf32> -> vector<1x128xf32>
    %c0_18 = arith.constant 0 : index
    %c0_19 = arith.constant 0 : index
    %38 = vector.load %arg5[%c0_18, %c0_19] : memref<1x128xf32, #tpu.memory_space<vmem>>, vector<1x128xf32>
    %39 = arith.addf %37, %38 : vector<1x128xf32>
    %40 = vector.shape_cast %39 : vector<1x128xf32> to vector<1x1x128xf32>
    %41 = vector.broadcast %40 : vector<1x1x128xf32> to vector<1x17x128xf32>
    %42 = arith.mulf %33, %41 : vector<1x17x128xf32>
    %43 = vector.shape_cast %42 : vector<1x17x128xf32> to vector<17x128xf32>
    %c0_20 = arith.constant 0 : index
    %c0_21 = arith.constant 0 : index
    %44 = vector.load %arg8[%c0_20, %c0_21] : memref<128x4xf32, #tpu.memory_space<vmem>>, vector<128x4xf32>
    %cst_22 = arith.constant dense<0.000000e+00> : vector<17x4xf32>
    %45 = tpu.matmul %43, %44, %cst_22 {dimension_numbers = #tpu.dot_dimension_numbers<[1], [0], [0], [1], [0, 0, 1, 1], [], []>} : vector<17x128xf32>, vector<128x4xf32>, vector<17x4xf32> -> vector<17x4xf32>
    %46 = vector.shape_cast %45 : vector<17x4xf32> to vector<1x17x4xf32>
    %cst_23 = arith.constant dense<0xFF800000> : vector<1x4xf32>
    %47 = vector.multi_reduction <maximumf>, %46, %cst_23 [1] : vector<1x17x4xf32> to vector<1x4xf32>
    %48 = vector.shape_cast %47 : vector<1x4xf32> to vector<1x1x4xf32>
    %49 = vector.broadcast %48 : vector<1x1x4xf32> to vector<1x17x4xf32>
    %50 = arith.subf %46, %49 : vector<1x17x4xf32>
    %51 = math.exp %50 : vector<1x17x4xf32>
    %cst_24 = arith.constant dense<0.000000e+00> : vector<1x4xf32>
    %52 = vector.multi_reduction <add>, %51, %cst_24 [1] : vector<1x17x4xf32> to vector<1x4xf32>
    %53 = vector.shape_cast %52 : vector<1x4xf32> to vector<1x1x4xf32>
    %54 = vector.broadcast %53 : vector<1x1x4xf32> to vector<1x17x4xf32>
    %55 = arith.divf %51, %54 : vector<1x17x4xf32>
    %56 = vector.shape_cast %55 : vector<1x17x4xf32> to vector<17x4xf32>
    %c0_25 = arith.constant 0 : index
    %c0_26 = arith.constant 0 : index
    %57 = vector.load %arg9[%c0_25, %c0_26] : memref<4x128xf32, #tpu.memory_space<vmem>>, vector<4x128xf32>
    %cst_27 = arith.constant dense<0.000000e+00> : vector<17x128xf32>
    %58 = tpu.matmul %56, %57, %cst_27 {dimension_numbers = #tpu.dot_dimension_numbers<[1], [0], [0], [1], [0, 0, 1, 1], [], []>} : vector<17x4xf32>, vector<4x128xf32>, vector<17x128xf32> -> vector<17x128xf32>
    %59 = vector.shape_cast %58 : vector<17x128xf32> to vector<1x17x128xf32>
    %60 = arith.mulf %59, %33 : vector<1x17x128xf32>
    %cst_28 = arith.constant dense<0.000000e+00> : vector<1x128xf32>
    %61 = vector.multi_reduction <add>, %60, %cst_28 [1] : vector<1x17x128xf32> to vector<1x128xf32>
    %62 = vector.extract_strided_slice %0 {offsets = [0, 0, 0], sizes = [1, 1, 64], strides = [1, 1, 1]} : vector<1x17x64xf32> to vector<1x1x64xf32>
    %63 = vector.shape_cast %62 : vector<1x1x64xf32> to vector<1x64xf32>
    %c0_29 = arith.constant 0 : index
    %c0_30 = arith.constant 0 : index
    %64 = vector.load %arg10[%c0_29, %c0_30] : memref<128x64xf32, #tpu.memory_space<vmem>>, vector<128x64xf32>
    %cst_31 = arith.constant dense<0.000000e+00> : vector<1x64xf32>
    %65 = tpu.matmul %61, %64, %cst_31 {dimension_numbers = #tpu.dot_dimension_numbers<[1], [0], [0], [1], [0, 0, 1, 1], [], []>} : vector<1x128xf32>, vector<128x64xf32>, vector<1x64xf32> -> vector<1x64xf32>
    %66 = arith.addf %63, %65 : vector<1x64xf32>
    %c0_32 = arith.constant 0 : index
    %c0_33 = arith.constant 0 : index
    %67 = vector.load %arg11[%c0_32, %c0_33] : memref<1x64xf32, #tpu.memory_space<vmem>>, vector<1x64xf32>
    %68 = arith.addf %66, %67 : vector<1x64xf32>
    %69 = tpu.concatenate %68, %68 in 1 : vector<1x64xf32>, vector<1x64xf32> -> vector<1x128xf32>
    %c0_34 = arith.constant 0 : index
    %c0_35 = arith.constant 0 : index
    %70 = vector.load %arg12[%c0_34, %c0_35] : memref<1x128xf32, #tpu.memory_space<vmem>>, vector<1x128xf32>
    %c0_36 = arith.constant 0 : index
    %c0_37 = arith.constant 0 : index
    %71 = vector.load %arg13[%c0_36, %c0_37] : memref<1x128xf32, #tpu.memory_space<vmem>>, vector<1x128xf32>
    %cst_38 = arith.constant dense<0.000000e+00> : vector<1xf32>
    %72 = vector.multi_reduction <add>, %69, %cst_38 [1] : vector<1x128xf32> to vector<1xf32>
    %73 = vector.shape_cast %72 : vector<1xf32> to vector<1x1xf32>
    %cst_39 = arith.constant 1.280000e+02 : f32
    %74 = vector.broadcast %cst_39 : f32 to vector<1x1xf32>
    %75 = arith.divf %73, %74 : vector<1x1xf32>
    %76 = vector.broadcast %75 : vector<1x1xf32> to vector<1x128xf32>
    %77 = arith.subf %69, %76 : vector<1x128xf32>
    %78 = arith.mulf %77, %77 : vector<1x128xf32>
    %cst_40 = arith.constant dense<0.000000e+00> : vector<1xf32>
    %79 = vector.multi_reduction <add>, %78, %cst_40 [1] : vector<1x128xf32> to vector<1xf32>
    %80 = vector.shape_cast %79 : vector<1xf32> to vector<1x1xf32>
    %cst_41 = arith.constant 1.280000e+02 : f32
    %81 = vector.broadcast %cst_41 : f32 to vector<1x1xf32>
    %82 = arith.divf %80, %81 : vector<1x1xf32>
    %83 = vector.broadcast %75 : vector<1x1xf32> to vector<1x128xf32>
    %84 = arith.subf %69, %83 : vector<1x128xf32>
    %cst_42 = arith.constant 9.99999974E-6 : f32
    %85 = vector.broadcast %cst_42 : f32 to vector<1x1xf32>
    %86 = arith.addf %82, %85 : vector<1x1xf32>
    %87 = math.rsqrt %86 : vector<1x1xf32>
    %88 = vector.broadcast %87 : vector<1x1xf32> to vector<1x128xf32>
    %89 = arith.mulf %84, %88 : vector<1x128xf32>
    %90 = arith.mulf %89, %70 : vector<1x128xf32>
    %91 = arith.addf %90, %71 : vector<1x128xf32>
    %c0_43 = arith.constant 0 : index
    %c0_44 = arith.constant 0 : index
    %92 = vector.load %arg14[%c0_43, %c0_44] : memref<128x256xf32, #tpu.memory_space<vmem>>, vector<128x256xf32>
    %cst_45 = arith.constant dense<0.000000e+00> : vector<1x256xf32>
    %93 = tpu.matmul %91, %92, %cst_45 {dimension_numbers = #tpu.dot_dimension_numbers<[1], [0], [0], [1], [0, 0, 1, 1], [], []>} : vector<1x128xf32>, vector<128x256xf32>, vector<1x256xf32> -> vector<1x256xf32>
    %c0_46 = arith.constant 0 : index
    %c0_47 = arith.constant 0 : index
    %94 = vector.load %arg15[%c0_46, %c0_47] : memref<1x256xf32, #tpu.memory_space<vmem>>, vector<1x256xf32>
    %95 = arith.addf %93, %94 : vector<1x256xf32>
    %cst_48 = arith.constant 1.702000e+00 : f32
    %96 = vector.broadcast %cst_48 : f32 to vector<1x256xf32>
    %97 = arith.mulf %96, %95 : vector<1x256xf32>
    %98 = arith.negf %97 : vector<1x256xf32>
    %99 = math.exp %98 : vector<1x256xf32>
    %cst_49 = arith.constant 1.000000e+00 : f32
    %100 = vector.broadcast %cst_49 : f32 to vector<1x256xf32>
    %101 = arith.addf %100, %99 : vector<1x256xf32>
    %102 = arith.divf %100, %101 : vector<1x256xf32>
    %103 = arith.mulf %95, %102 : vector<1x256xf32>
    %c0_50 = arith.constant 0 : index
    %c0_51 = arith.constant 0 : index
    %104 = vector.load %arg16[%c0_50, %c0_51] : memref<256x128xf32, #tpu.memory_space<vmem>>, vector<256x128xf32>
    %cst_52 = arith.constant dense<0.000000e+00> : vector<1x128xf32>
    %105 = tpu.matmul %103, %104, %cst_52 {dimension_numbers = #tpu.dot_dimension_numbers<[1], [0], [0], [1], [0, 0, 1, 1], [], []>} : vector<1x256xf32>, vector<256x128xf32>, vector<1x128xf32> -> vector<1x128xf32>
    %106 = arith.addf %69, %105 : vector<1x128xf32>
    %c0_53 = arith.constant 0 : index
    %c0_54 = arith.constant 0 : index
    %107 = vector.load %arg17[%c0_53, %c0_54] : memref<1x128xf32, #tpu.memory_space<vmem>>, vector<1x128xf32>
    %108 = arith.addf %106, %107 : vector<1x128xf32>
    %c0_55 = arith.constant 0 : index
    %c0_56 = arith.constant 0 : index
    %109 = vector.load %arg18[%c0_55, %c0_56] : memref<1x128xf32, #tpu.memory_space<vmem>>, vector<1x128xf32>
    %c0_57 = arith.constant 0 : index
    %c0_58 = arith.constant 0 : index
    %110 = vector.load %arg19[%c0_57, %c0_58] : memref<1x128xf32, #tpu.memory_space<vmem>>, vector<1x128xf32>
    %cst_59 = arith.constant dense<0.000000e+00> : vector<1xf32>
    %111 = vector.multi_reduction <add>, %108, %cst_59 [1] : vector<1x128xf32> to vector<1xf32>
    %112 = vector.shape_cast %111 : vector<1xf32> to vector<1x1xf32>
    %cst_60 = arith.constant 1.280000e+02 : f32
    %113 = vector.broadcast %cst_60 : f32 to vector<1x1xf32>
    %114 = arith.divf %112, %113 : vector<1x1xf32>
    %115 = vector.broadcast %114 : vector<1x1xf32> to vector<1x128xf32>
    %116 = arith.subf %108, %115 : vector<1x128xf32>
    %117 = arith.mulf %116, %116 : vector<1x128xf32>
    %cst_61 = arith.constant dense<0.000000e+00> : vector<1xf32>
    %118 = vector.multi_reduction <add>, %117, %cst_61 [1] : vector<1x128xf32> to vector<1xf32>
    %119 = vector.shape_cast %118 : vector<1xf32> to vector<1x1xf32>
    %cst_62 = arith.constant 1.280000e+02 : f32
    %120 = vector.broadcast %cst_62 : f32 to vector<1x1xf32>
    %121 = arith.divf %119, %120 : vector<1x1xf32>
    %122 = vector.broadcast %114 : vector<1x1xf32> to vector<1x128xf32>
    %123 = arith.subf %108, %122 : vector<1x128xf32>
    %cst_63 = arith.constant 9.99999974E-6 : f32
    %124 = vector.broadcast %cst_63 : f32 to vector<1x1xf32>
    %125 = arith.addf %121, %124 : vector<1x1xf32>
    %126 = math.rsqrt %125 : vector<1x1xf32>
    %127 = vector.broadcast %126 : vector<1x1xf32> to vector<1x128xf32>
    %128 = arith.mulf %123, %127 : vector<1x128xf32>
    %129 = arith.mulf %128, %109 : vector<1x128xf32>
    %130 = arith.addf %129, %110 : vector<1x128xf32>
    %c0_64 = arith.constant 0 : index
    %c0_65 = arith.constant 0 : index
    %c0_66 = arith.constant 0 : index
    %131 = vector.load %arg20[%c0_64, %c0_65, %c0_66] : memref<1x1x128xf32, #tpu.memory_space<vmem>>, vector<1x1x128xf32>
    %132 = vector.shape_cast %131 : vector<1x1x128xf32> to vector<1x128xf32>
    %133 = vector.shape_cast %130 : vector<1x128xf32> to vector<1x1x128xf32>
    tpu.vector_store %arg20[%c0_64, %c0_65, %c0_66], %133 {strides = array<i32>} : memref<1x1x128xf32, #tpu.memory_space<vmem>>, vector<1x1x128xf32>,
    return
  }
  func.func @transform_0(%arg0: i32) -> (i32, i32, i32) {
    %c0_i32 = arith.constant 0 : i32
    %c0_i32_0 = arith.constant 0 : i32
    %c0_i32_1 = arith.constant 0 : i32
    return %arg0, %c0_i32, %c0_i32_0 : i32, i32, i32
  }
  func.func @transform_1(%arg0: i32) -> (i32, i32) {
    %c0_i32 = arith.constant 0 : i32
    %c0_i32_0 = arith.constant 0 : i32
    %c0_i32_1 = arith.constant 0 : i32
    return %c0_i32, %c0_i32_0 : i32, i32
  }
  func.func @transform_2(%arg0: i32) -> (i32, i32) {
    %c0_i32 = arith.constant 0 : i32
    %c0_i32_0 = arith.constant 0 : i32
    %c0_i32_1 = arith.constant 0 : i32
    return %c0_i32, %c0_i32_0 : i32, i32
  }
  func.func @transform_3(%arg0: i32) -> (i32, i32) {
    %c0_i32 = arith.constant 0 : i32
    %c0_i32_0 = arith.constant 0 : i32
    %c0_i32_1 = arith.constant 0 : i32
    return %c0_i32, %c0_i32_0 : i32, i32
  }
  func.func @transform_4(%arg0: i32) -> (i32, i32) {
    %c0_i32 = arith.constant 0 : i32
    %c0_i32_0 = arith.constant 0 : i32
    %c0_i32_1 = arith.constant 0 : i32
    return %c0_i32, %c0_i32_0 : i32, i32
  }
  func.func @transform_5(%arg0: i32) -> (i32, i32) {
    %c0_i32 = arith.constant 0 : i32
    %c0_i32_0 = arith.constant 0 : i32
    %c0_i32_1 = arith.constant 0 : i32
    return %c0_i32, %c0_i32_0 : i32, i32
  }
  func.func @transform_6(%arg0: i32) -> (i32, i32) {
    %c0_i32 = arith.constant 0 : i32
    %c0_i32_0 = arith.constant 0 : i32
    %c0_i32_1 = arith.constant 0 : i32
    return %c0_i32, %c0_i32_0 : i32, i32
  }
  func.func @transform_7(%arg0: i32) -> (i32, i32) {
    %c0_i32 = arith.constant 0 : i32
    %c0_i32_0 = arith.constant 0 : i32
    %c0_i32_1 = arith.constant 0 : i32
    return %c0_i32, %c0_i32_0 : i32, i32
  }
  func.func @transform_8(%arg0: i32) -> (i32, i32) {
    %c0_i32 = arith.constant 0 : i32
    %c0_i32_0 = arith.constant 0 : i32
    %c0_i32_1 = arith.constant 0 : i32
    return %c0_i32, %c0_i32_0 : i32, i32
  }
  func.func @transform_9(%arg0: i32) -> (i32, i32) {
    %c0_i32 = arith.constant 0 : i32
    %c0_i32_0 = arith.constant 0 : i32
    %c0_i32_1 = arith.constant 0 : i32
    return %c0_i32, %c0_i32_0 : i32, i32
  }
  func.func @transform_10(%arg0: i32) -> (i32, i32) {
    %c0_i32 = arith.constant 0 : i32
    %c0_i32_0 = arith.constant 0 : i32
    %c0_i32_1 = arith.constant 0 : i32
    return %c0_i32, %c0_i32_0 : i32, i32
  }
  func.func @transform_11(%arg0: i32) -> (i32, i32) {
    %c0_i32 = arith.constant 0 : i32
    %c0_i32_0 = arith.constant 0 : i32
    %c0_i32_1 = arith.constant 0 : i32
    return %c0_i32, %c0_i32_0 : i32, i32
  }
  func.func @transform_12(%arg0: i32) -> (i32, i32) {
    %c0_i32 = arith.constant 0 : i32
    %c0_i32_0 = arith.constant 0 : i32
    %c0_i32_1 = arith.constant 0 : i32
    return %c0_i32, %c0_i32_0 : i32, i32
  }
  func.func @transform_13(%arg0: i32) -> (i32, i32) {
    %c0_i32 = arith.constant 0 : i32
    %c0_i32_0 = arith.constant 0 : i32
    %c0_i32_1 = arith.constant 0 : i32
    return %c0_i32, %c0_i32_0 : i32, i32
  }
  func.func @transform_14(%arg0: i32) -> (i32, i32) {
    %c0_i32 = arith.constant 0 : i32
    %c0_i32_0 = arith.constant 0 : i32
    %c0_i32_1 = arith.constant 0 : i32
    return %c0_i32, %c0_i32_0 : i32, i32
  }
  func.func @transform_15(%arg0: i32) -> (i32, i32) {
    %c0_i32 = arith.constant 0 : i32
    %c0_i32_0 = arith.constant 0 : i32
    %c0_i32_1 = arith.constant 0 : i32
    return %c0_i32, %c0_i32_0 : i32, i32
  }
  func.func @transform_16(%arg0: i32) -> (i32, i32) {
    %c0_i32 = arith.constant 0 : i32
    %c0_i32_0 = arith.constant 0 : i32
    %c0_i32_1 = arith.constant 0 : i32
    return %c0_i32, %c0_i32_0 : i32, i32
  }
  func.func @transform_17(%arg0: i32) -> (i32, i32) {
    %c0_i32 = arith.constant 0 : i32
    %c0_i32_0 = arith.constant 0 : i32
    %c0_i32_1 = arith.constant 0 : i32
    return %c0_i32, %c0_i32_0 : i32, i32
  }
  func.func @transform_18(%arg0: i32) -> (i32, i32) {
    %c0_i32 = arith.constant 0 : i32
    %c0_i32_0 = arith.constant 0 : i32
    %c0_i32_1 = arith.constant 0 : i32
    return %c0_i32, %c0_i32_0 : i32, i32
  }
  func.func @transform_19(%arg0: i32) -> (i32, i32, i32) {
    %c0_i32 = arith.constant 0 : i32
    %c0_i32_0 = arith.constant 0 : i32
    %c0_i32_1 = arith.constant 0 : i32
    return %arg0, %c0_i32, %c0_i32_0 : i32, i32, i32
  }
}

</mosaic_0001>

<bundles_post_ra>
// kernel: tpu_custom_call.1
= control target key start
LH: loop header
LB: loop body
LE: loop exit
PB: predicated region body
PF: predicated region fallthrough
CT: control target
= control target key end

     0   :  { %s2757_s0 = inlined_call_operand.vmem [shape: f32[2,17,64], index: 0, kind: input, shape index: {}]   ;;  %s2758_s1 = inlined_call_operand.vmem [shape: f32[1,64], index: 1, kind: input, shape index: {}]   ;;  %s2759_s2 = inlined_call_operand.vmem [shape: f32[1,64], index: 2, kind: input, shape index: {}]   ;;  %s2760_s3 = inlined_call_operand.vmem [shape: f32[64,128], index: 3, kind: input, shape index: {}]   ;;  %s2761_s4 = inlined_call_operand.vmem [shape: f32[1,128], index: 4, kind: input, shape index: {}]   ;;  %s2762_s5 = inlined_call_operand.vmem [shape: f32[64,128], index: 5, kind: input, shape index: {}]   ;;  %s2763_s6 = inlined_call_operand.vmem [shape: f32[1,128], index: 6, kind: input, shape index: {}]   ;;  %s2764_s7 = inlined_call_operand.vmem [shape: f32[128,4], index: 7, kind: input, shape index: {}]   ;;  %s2765_s8 = inlined_call_operand.vmem [shape: f32[4,128], index: 8, kind: input, shape index: {}]   ;;  %s2766_s9 = inlined_call_operand.vmem [shape: f32[128,64], index: 9, kind: input, shape index: {}]   ;;  %s2767_s10 = inlined_call_operand.vmem [shape: f32[1,64], index: 10, kind: input, shape index: {}]   ;;  %s2768_s11 = inlined_call_operand.vmem [shape: f32[1,128], index: 11, kind: input, shape index: {}]   ;;  %s2769_s12 = inlined_call_operand.vmem [shape: f32[1,128], index: 12, kind: input, shape index: {}]   ;;  %s2770_s13 = inlined_call_operand.vmem [shape: f32[128,256], index: 13, kind: input, shape index: {}]   ;;  %s2771_s14 = inlined_call_operand.vmem [shape: f32[1,256], index: 14, kind: input, shape index: {}]   ;;  %s2772_s15 = inlined_call_operand.hbm [shape: f32[256,128], index: 15, kind: input, shape index: {}]   ;;  %s2773_s16 = inlined_call_operand.vmem [shape: f32[1,128], index: 16, kind: input, shape index: {}]   ;;  %s2774_s17 = inlined_call_operand.vmem [shape: f32[1,128], index: 17, kind: input, shape index: {}]   ;;  %s2775_s18 = inlined_call_operand.vmem [shape: f32[1,128], index: 18, kind: input, shape index: {}]   ;;  %s2776_s19 = inlined_call_operand.hbm [shape: f32[2,1,128], index: 19, kind: output, shape index: {}]  }
   0x1   :  { %2786 = sst [smem:[#allocation13_spill]] %s2757_s0 }
   0x2   :  { %2787 = sst [smem:[#allocation14_spill]] %s2758_s1 }
   0x3   :  { %2788 = sst [smem:[#allocation15_spill]] %s2759_s2 }
   0x4   :  { %2789 = sst [smem:[#allocation16_spill]] %s2760_s3 }
   0x5   :  { %2790 = sst [smem:[#allocation17_spill]] %s2761_s4 }
   0x6   :  { %24 = vsyncpa [#allocation3], 0 }
   0x7   :  { %25 = vsyncpa [#allocation4], 0 }
   0x8   :  { %27 = vsyncpa [#allocation4 + $0x1], 0  ;;  %s2228_s0 = smov 0   ;;  %s2230_s30 = smov 0  }
   0x9   :  { %s2232_s20 = smov 0   ;;  %s2234_s21 = smov 0  }
   0xa LB: > { %2791 = sst [smem:[#allocation8_spill]] %s2106_s0  ;;  %s2249_s1 = sadd.s32 4294967295, %s2118_s21   ;;  %s2118_s21 = sphi %s2234_s21, %s2812_s21   ;;  %s2114_s20 = sphi %s2232_s20, %s2814_s20   ;;  %s2110_s30 = sphi %s2230_s30, %s2816_s30   ;;  %s2106_s0 = sphi %s2228_s0, %s2815_s0  }
   0xb   : > { %2792 = sst [smem:[#allocation9_spill]] %s2114_s20  ;;  %s1556_s22 = sadd.s32 4294967294, %s2118_s21  }
   0xc   : > { %s2253_s2 = sadd.s32 1, %s2118_s21   ;;  %s444_s23 = sadd.s32 1, %s2114_s20 }
   0xd   : > { %2793 = sst [smem:[#allocation10_spill]] %s2253_s2  ;;  %s441_s24 = ssub.s32 %s2118_s21, %s2253_s2 }
   0xe   : > { %p454_p0 = scmp.ne.s32.totalorder %s2114_s20, %s2110_s30  ;;  %p442_p1 = scmp.eq.s32.totalorder %s441_s24, 0 }
   0xf   : > { %p455_p2 = scmp.eq.s32.totalorder %s2249_s1, 1  ;;  %p460_p3 = scmp.ne.s32.totalorder %s2110_s30, %s2106_s0 }
  0x10   : > { %p461_p4 = scmp.eq.s32.totalorder %s1556_s22, 1  ;;  %p1557_p7 = scmp.ge.s32.totalorder %s2118_s21, 1 }
  0x11   : > { %s2264_s25 = scalar_select %p442_p1, %s2114_s20, %s444_s23  }
  0x12   : > { %p2266_p5 = por %p455_p2, %p454_p0  ;;  %p2270_p6 = por %p461_p4, %p460_p3 }
  0x13   : > { %2794 = sst [smem:[#allocation11_spill]] %s2264_s25  ;;  %p468_p8 = scmp.lt.s32.totalorder %s2118_s21, 3 }
  0x14   : > { %s2795_s3 = scalar_select %p2266_p5, 1, 0 }
  0x15   : > { %s2796_s26 = scalar_select %p2270_p6, 1, 0 }
  0x16   : > { %p2783_p9 = scmp.eq.s32.totalorder %s2249_s1, 0  ;;  %p2277_p10 = pnand %p1557_p7, %p468_p8 }
  0x17   : > { %2797 = sst [smem:[#allocation12_spill]] %s2796_s26  ;;  %s2120_s28 = smov [#allocation2]  }
  0x18   : > { %s2798_s27 = scalar_select %p2277_p10, 1, 0 }
  0x19   : > { %s522_s29 = sshll.u32 %s2120_s28, 4  ;;  %p1948_p11 = pneg %p2277_p10  ;;  %s523_s29 = int_to_ptr.vmem [resolvable:$true] %s522_s29 }
  0x1a   : > { %s2024_s25 = scalar_lea.hbm %s2772_s15, 4096 }
  0x1b   : > { %p2285_p12 = pnand %p2783_p9, %p1948_p11  ;;  %p2025_p13 = scmp.ne.s32.totalorder %s2772_s15, %s2024_s25 }
  0x1c   : > { %p2031_p3 = scmp.lt.u32.totalorder %s2024_s25, %s2772_s15 }
  0x1d   : > { %p2026_p0 = pneg %p2285_p12 }
  0x1f   : > { %p2027_p1 = pnand %p2026_p0, %p2025_p13 }
  0x21   : > { %p2028_p2 = pneg %p2027_p1 }
  0x23   : > { %p2033_p4 = pnand %p2031_p3, %p2028_p2 }
  0x25   : > { %2036 = shalt.err (!%p2033_p4)
}
  0x26   : > { %s2037_s0 = scalar_lea.vmem %s523_s29, 4096  ;;  %p2045_p9 = scmp.lt.s32.totalorder %s523_s29, %s523_s29 }
  0x27   : > { %p2038_p7 = scmp.ne.s32.totalorder %s523_s29, %s2037_s0  ;;  %p2046_p6 = scmp.lt.s32.totalorder %s2037_s0, %s2037_s0 }
  0x29   : > { %p2040_p8 = pnand %p2038_p7, %p2026_p0  ;;  %p2047_p5 = por %p2046_p6, %p2045_p9 }
  0x2b   : > { %p2041_p11 = pneg %p2040_p8 }
  0x2d   : > { %p2048_p10 = pnand %p2047_p5, %p2041_p11 }
  0x2f   : > { %2051 = shalt.err (!%p2048_p10)
}
  0x30   : > { %s2121_s20 = smov 128   ;;  %s2122_s2 = smov 8  }
  0x31   : > { %1951 = dma.hbm_to_vmem [thread:$0]  (!%p2285_p12), %s2772_s15, 4096, %s523_s29, [#allocation3], %s2121_s20, %s2121_s20, %s2122_s2  }
  0x32   : > { %p2800_p13 = scmp.ne.s32.totalorder %s2798_s27, 0 }
  0x33   : > { %p2801_p1 = scmp.eq.s32.totalorder (!%p2800_p13), %s2249_s1, 0 }
  0x34   : > { %555 = sbr.rel (%p2800_p13) target bundleno = 2554 (0x9fa), region = 96 }
  0x3b   : > { %2097 = dma.done.wait (%p2801_p1), [#allocation3], 4096   ;;  %p2802_p0 = pmov %p2801_p1 }
  0x3c   : > { %p610_p5 = scmp.lt.s32.totalorder %s2249_s1, 1  ;;  %vm620_vm0 = vcmask 523264   ;;  %vm627_vm1 = vcmask 516096   ;;  %s2803_s28 = sld [smem:[#allocation13_spill]]  ;;  %v680_v21 = vld [vmem:[%s2762_s5] sm:$0xff]  ;;  %v681_v22 = vld [vmem:[%s2762_s5 + $0x8] sm:$0xff] }
  0x3d   : > { %2099 = vsyncadd (%p2802_p0), [#allocation3], 4294963200  ;;  %v1806_v24 = vpack.c.bf16 %v681_v22, %v680_v21  ;;  %v2123_v26 = vmov 0.0|0.0   ;;  %v682_v28 = vld [vmem:[%s2762_s5 + $0x10] sm:$0xff]  ;;  %v683_v29 = vld [vmem:[%s2762_s5 + $0x18] sm:$0xff]  ;;  %vm2124_vm2 = vmmov 0  }
  0x3e   : > { %s611_s0 = scalar_select %p610_p5, %s2249_s1, 1  ;;  %1805 = vmatprep.subr.bf16.mxu0 %v2123_v26  ;;  %1817 = vmatprep.subr.bf16.mxu1 %v2123_v26  ;;  %v1809_v31 = vpack.c.bf16 %v683_v29, %v682_v28  ;;  %v684_v33 = vld [vmem:[%s2762_s5 + $0x20] sm:$0xff]  ;;  %v685_v34 = vld [vmem:[%s2762_s5 + $0x28] sm:$0xff]  ;;  %v2125_v38 = vmov 0.0   ;;  %v686_v41 = vld [vmem:[%s2762_s5 + $0x30] sm:$0xff]  ;;  %vm1013_vm3 = vcmask 1043456  }
  0x3f   : > { %1807 = vmatpush3.bf16.msra.mxu0 %v1806_v24  ;;  %1690 = vmatprep.mubr.msk.f32.mxu0 %vm2124_vm2, %v2125_v38  ;;  %v1812_v39 = vpack.c.bf16 %v685_v34, %v684_v33  ;;  %v687_v42 = vld [vmem:[%s2762_s5 + $0x38] sm:$0xff]  ;;  %s2805_s24 = sld [smem:[#allocation14_spill]]  ;;  %v870_v59 = vld [vmem:[%s2764_s7] sm:$0xff]  ;;  %v871_v60 = vld [vmem:[%s2764_s7 + $0x8] sm:$0xff]  ;;  %s2806_s20 = sld [smem:[#allocation15_spill]]  ;;  %vm966_vm4 = vcmask 31744  }
  0x40   : > { %s1941_s25 = smul.u32 24, %s611_s0  ;;  %1808 = vmatprep.subr.bf16.mxu0 %v2123_v26  ;;  %1715 = vmatprep.mubr.msk.f32.mxu1 %vm2124_vm2, %v2125_v38  ;;  %v1815_v45 = vpack.c.bf16 %v687_v42, %v686_v41  ;;  %v880_v22 = vld [vmem:[%s2764_s7 + $0x50] sm:$0xff]  ;;  %s2807_s4 = sld [smem:[#allocation17_spill]]  ;;  %vm969_vm5 = vcmask 24576   ;;  %vm1101_vm6 = vcmask 1040384  }
  0x41   : > { %v884_v29 = vld [vmem:[%s2764_s7 + $0x70] sm:$0xff]  ;;  %s2126_s27 = smov 64   ;;  %s608_s22 = sand.u32 1, %s2110_s30  }
  0x42   : > { %s614_s29 = scalar_lea.vmem %s2803_s28, %s1941_s25  ;;  %s2804_s25 = sld [smem:[#allocation16_spill]] }
  0x43   : > { %v2316_v0 = vld [vmem:[%s614_s29] sm:$0xff]  ;;  %v617_v1 = vld [vmem:[%s614_s29 + $0x10] sm:$0x1]  ;;  %v616_v2 = vld [vmem:[%s614_s29 + $0x8] sm:$0xff]  ;;  %1810 = vmatpush3.bf16.msra.mxu0 %v1809_v31  ;;  %s609_s2 = scalar_lea.vmem [#allocation5], %s608_s22  ;;  %s1477_s28 = scalar_lea.sflag [#allocation4], %s608_s22 }
  0x44   : > { %v621_v3 = vsel %vm620_vm0, %v2316_v0, 0.0  ;;  %v628_v4 = vsel %vm627_vm1, %v617_v1, 0.0  ;;  %v624_v5 = vsel %vm620_vm0, %v616_v2, 0.0  ;;  %1811 = vmatprep.subr.bf16.mxu0 %v2123_v26  ;;  %s1489_s23 = sshll.u32 %s609_s2, 4  ;;  %p2808_p9 = scmp.ne.s32.totalorder %s2795_s3, 0  ;;  %s2717_s23 = int_to_ptr.vmem [resolvable:$true] %s1489_s23 }
  0x45   : > { %622 = vadd.xlane.f32.xlu0 %v621_v3  ;;  %629 = vadd.xlane.f32.xlu1 %v628_v4  ;;  %v1563_v57 = vld [vmem:[%s2805_s24] ss:$0 sm:$0xff]  ;;  %s2052_s29 = scalar_lea.vmem %s2717_s23, 16 }
  0x46   : > { %v1564_v61 = vld [vmem:[%s2806_s20] ss:$0 sm:$0xff]  ;;  %s1576_s20 = sshll.u32 %s2249_s1, 4  ;;  %p2053_p6 = scmp.ne.s32.totalorder %s2717_s23, %s2052_s29 }
  0x47   : > { %1813 = vmatpush3.bf16.msra.mxu0 %v1812_v39  ;;  %v792_v34 = vld [vmem:[%s2807_s4] sm:$0x1]  ;;  %s2715_s26 = scalar_lea.hbm %s2776_s19, %s1576_s20  ;;  %s2127_s1 = smov [#allocation5]  }
  0x48   : > { %v784_v23 = vld [vmem:[%s2804_s25] sm:$0xff]  ;;  %v785_v25 = vld [vmem:[%s2804_s25 + $0x8] sm:$0xff]  ;;  %v786_v30 = vld [vmem:[%s2804_s25 + $0x10] sm:$0xff]  ;;  %1814 = vmatprep.subr.bf16.mxu0 %v2123_v26  ;;  %p2054_p10 = pnand %p2053_p6, %p2808_p9  ;;  %s2056_s4 = sshll.u32 %s2127_s1, 4  ;;  %s2057_s4 = int_to_ptr.vmem [resolvable:$false] %s2056_s4 }
  0x49   : > { %625 = vadd.xlane.f32.xlu0 %v624_v5  ;;  %v1818_v27 = vpack.c.bf16 %v785_v25, %v784_v23  ;;  %v787_v32 = vld [vmem:[%s2804_s25 + $0x18] sm:$0xff]  ;;  %v788_v36 = vld [vmem:[%s2804_s25 + $0x20] sm:$0xff]  ;;  %v789_v37 = vld [vmem:[%s2804_s25 + $0x28] sm:$0xff]  ;;  %p2059_p2 = scmp.lt.s32.totalorder %s2717_s23, %s2057_s4 }
  0x4a   : > { %v1821_v35 = vpack.c.bf16 %v787_v32, %v786_v30  ;;  %v1824_v40 = vpack.c.bf16 %v789_v37, %v788_v36  ;;  %v790_v43 = vld [vmem:[%s2804_s25 + $0x30] sm:$0xff]  ;;  %v791_v44 = vld [vmem:[%s2804_s25 + $0x38] sm:$0xff]  ;;  %v882_v25 = vld [vmem:[%s2764_s7 + $0x60] sm:$0xff]  ;;  %v863_v32 = vlaneseq  ;;  %p2055_p12 = pneg %p2054_p10 }
  0x4b   : > { %1819 = vmatpush3.bf16.msra.mxu1 %v1818_v27  ;;  %v1827_v46 = vpack.c.bf16 %v791_v44, %v790_v43  ;;  %1816 = vmatpush3.bf16.msra.mxu0 %v1815_v45  ;;  %v881_v23 = vld [vmem:[%s2764_s7 + $0x58] sm:$0xff]  ;;  %v883_v27 = vld [vmem:[%s2764_s7 + $0x68] sm:$0xff]  ;;  %v1565_v36 = vld [vmem:[%s2763_s6] ss:$0 sm:$0xff] }
  0x4c   : > { %1820 = vmatprep.subr.bf16.mxu1 %v2123_v26  ;;  %1829 = vmatprep.subr.bf16.mxu0 %v2123_v26  ;;  %v1845_v24 = vpack.c.bf16 %v881_v23, %v880_v22  ;;  %v1848_v28 = vpack.c.bf16 %v883_v27, %v882_v25  ;;  %v885_v30 = vld [vmem:[%s2764_s7 + $0x78] sm:$0xff]  ;;  %v2476_v33 = vshrl.u32 %v863_v32, 7 }
  0x4d   : > { %v1851_v31 = vpack.c.bf16 %v885_v30, %v884_v29  ;;  %v1110_v30 = vld [vmem:[%s2766_s9] sm:$0xff] }
  0x4f   : > { %1822 = vmatpush3.bf16.msra.mxu1 %v1821_v35  ;;  %v865_v35 = vsub.s32 0, %v2476_v33 }
  0x50   : > { %1823 = vmatprep.subr.bf16.mxu1 %v2123_v26 }
  0x53   : > { %1825 = vmatpush3.bf16.msra.mxu1 %v1824_v40 }
  0x54   : > { %1826 = vmatprep.subr.bf16.mxu1 %v2123_v26 }
  0x57   : > { %1828 = vmatpush3.bf16.msra.mxu1 %v1827_v46 }
  0x58   : > { %1759 = vmatprep.subr.mxu1 %v2125_v38 }
  0xd2   : > { %v623_v6 = vpop.xlane.xlu0 %622  ;;  %v630_v7 = vpop.xlane.xlu1 %629 }
  0xd3   : > { %v632_v8 = vmul.f32 0.015625, %v623_v6  ;;  %v634_v9 = vmul.f32 0.015625, %v630_v7  ;;  %v872_v6 = vld [vmem:[%s2764_s7 + $0x10] sm:$0xff]  ;;  %v873_v7 = vld [vmem:[%s2764_s7 + $0x18] sm:$0xff] }
  0xd5   : > { %v2323_v10 = vsub.f32 %v2316_v0, %v632_v8  ;;  %v2325_v11 = vsub.f32 %v617_v1, %v634_v9  ;;  %v1830_v1 = vpack.c.bf16 %v871_v60, %v870_v59  ;;  %v1833_v9 = vpack.c.bf16 %v873_v7, %v872_v6 }
  0xd6   : > { %v626_v12 = vpop.xlane.xlu0 %625 }
  0xd7   : > { %v633_v13 = vmul.f32 0.015625, %v626_v12  ;;  %v638_v14 = vmul.f32 %v2323_v10, %v2323_v10  ;;  %v640_v15 = vmul.f32 %v2325_v11, %v2325_v11  ;;  %v874_v12 = vld [vmem:[%s2764_s7 + $0x20] sm:$0xff] }
  0xd9   : > { %v2331_v16 = vsub.f32 %v616_v2, %v633_v13  ;;  %v641_v17 = vsel %vm620_vm0, %v638_v14, 0.0  ;;  %v647_v18 = vsel %vm627_vm1, %v640_v15, 0.0  ;;  %v875_v13 = vld [vmem:[%s2764_s7 + $0x28] sm:$0xff] }
  0xda   : > { %642 = vadd.xlane.f32.xlu1 %v641_v17  ;;  %v1836_v14 = vpack.c.bf16 %v875_v13, %v874_v12  ;;  %v877_v17 = vld [vmem:[%s2764_s7 + $0x38] sm:$0xff] }
  0xdb   : > { %v639_v19 = vmul.f32 %v2331_v16, %v2331_v16 }
  0xdd   : > { %v644_v20 = vsel %vm620_vm0, %v639_v19, 0.0  ;;  %v878_v19 = vld [vmem:[%s2764_s7 + $0x40] sm:$0xff] }
  0xde   : > { %648 = vadd.xlane.f32.xlu1 %v647_v18  ;;  %645 = vadd.xlane.f32.xlu0 %v644_v20  ;;  %v879_v20 = vld [vmem:[%s2764_s7 + $0x48] sm:$0xff] }
  0xdf   : > { %v1842_v21 = vpack.c.bf16 %v879_v20, %v878_v19 }
 0x167   : > { %v643_v47 = vpop.xlane.xlu1 %642 }
 0x168   : > { %v650_v48 = vmul.f32 0.015625, %v643_v47 }
 0x16a   : > { %v653_v49 = vadd.f32 1e-05, %v650_v48 }
 0x16b   : > { %v649_v50 = vpop.xlane.xlu1 %648  ;;  %v646_v51 = vpop.xlane.xlu0 %645 }
 0x16c   : > { %1998 = vrsqrt.f32 %v653_v49  ;;  %v652_v52 = vmul.f32 0.015625, %v649_v50  ;;  %v651_v53 = vmul.f32 0.015625, %v646_v51 }
 0x16e   : > { %v655_v54 = vadd.f32 1e-05, %v652_v52  ;;  %v654_v55 = vadd.f32 1e-05, %v651_v53 }
 0x170   : > { %2000 = vrsqrt.f32 %v655_v54  ;;  %v1003_v54 = vld [vmem:[%s2765_s8] sm:$0xf] }
 0x171   : > { %2002 = vrsqrt.f32 %v654_v55 }
 0x176   : > { %v1999_v56 = vpop.eup %1998 }
 0x177   : > { %v659_v58 = vmul.f32 %v1999_v56, %v2323_v10 }
 0x179   : > { %v668_v62 = vmul.f32 %v1563_v57, %v659_v58 }
 0x17a   : > { %v2001_v63 = vpop.eup %2000 }
 0x17b   : > { %v2003_v2 = vpop.eup %2002  ;;  %v677_v3 = vadd.f32 %v1564_v61, %v668_v62  ;;  %v661_v5 = vmul.f32 %v2001_v63, %v2325_v11 }
 0x17c   : > { %v660_v4 = vmul.f32 %v2003_v2, %v2331_v16  ;;  %v876_v16 = vld [vmem:[%s2764_s7 + $0x30] sm:$0xff] }
 0x17d   : > { %1691 = vmatmul.mubr.msk.f32.vlgmr.msra.gmra.mrb[0].mxu0 %vm620_vm0, %v677_v3  ;;  %1716 = vmatmul.mubr.msk.f32.vlgmr.msra.gmra.mrb[0].mxu1 %vm620_vm0, %v677_v3  ;;  %v670_v11 = vmul.f32 %v1563_v57, %v661_v5  ;;  %v1839_v18 = vpack.c.bf16 %v877_v17, %v876_v16 }
 0x17e   : > { %1693 = vmatprep.mubr.msk.f32.mxu0 %vm2124_vm2, %v2125_v38  ;;  %v669_v8 = vmul.f32 %v1563_v57, %v660_v4  ;;  %1831 = vmatpush3.bf16.msra.mxu0 %v1830_v1 }
 0x17f   : > { %1832 = vmatprep.subr.bf16.mxu0 %v2123_v26  ;;  %1761 = vmatprep.mubr.msk.f32.mxu1 %vm2124_vm2, %v2125_v38  ;;  %v679_v15 = vadd.f32 %v1564_v61, %v670_v11 }
 0x180   : > { %v678_v10 = vadd.f32 %v1564_v61, %v669_v8  ;;  %1760 = vmatpush3.msk.msra.mxu1 %vm1013_vm3, %v1003_v54  ;;  %v1120_v54 = vld [vmem:[%s2766_s9 + $0x50] sm:$0xff] }
 0x181   : > { %1853 = vmatprep.subr.bf16.mxu1 %v2123_v26 }
 0x182   : > { %1694 = vmatmul.mubr.msk.f32.gmra.mrb[2].mxu0 %vm620_vm0, %v678_v10 }
 0x183   : > { %1696 = vmatprep.mubr.msk.f32.mxu0 %vm2124_vm2, %v2125_v38  ;;  %1834 = vmatpush3.bf16.msra.mxu0 %v1833_v9 }
 0x184   : > { %1835 = vmatprep.subr.bf16.mxu0 %v2123_v26 }
 0x186   : > { %1697 = vmatmul.mubr.msk.f32.gmra.mrb[4].mxu0 %vm620_vm0, %v679_v15 }
 0x187   : > { %1837 = vmatpush3.bf16.msra.mxu0 %v1836_v14  ;;  %1750 = vmatprep.mubr.msk.f32.mxu0 %vm2124_vm2, %v2125_v38 }
 0x188   : > { %1838 = vmatprep.subr.bf16.mxu0 %v2123_v26 }
 0x18b   : > { %1840 = vmatpush3.bf16.msra.mxu0 %v1839_v18 }
 0x18c   : > { %1841 = vmatprep.subr.bf16.mxu0 %v2123_v26 }
 0x18f   : > { %1843 = vmatpush3.bf16.msra.mxu0 %v1842_v21 }
 0x190   : > { %1844 = vmatprep.subr.bf16.mxu0 %v2123_v26 }
 0x193   : > { %1846 = vmatpush3.bf16.msra.mxu0 %v1845_v24 }
 0x194   : > { %1847 = vmatprep.subr.bf16.mxu0 %v2123_v26 }
 0x197   : > { %1849 = vmatpush3.bf16.msra.mxu0 %v1848_v28 }
 0x198   : > { %1850 = vmatprep.subr.bf16.mxu0 %v2123_v26 }
 0x19b   : > { %1852 = vmatpush3.bf16.msra.mxu0 %v1851_v31  ;;  %v1111_v31 = vld [vmem:[%s2766_s9 + $0x8] sm:$0xff] }
 0x250   : > { %v770_v37 = vpop.f32.mrb[0].mxu0  ;;  %v859_v39 = vpop.f32.mrb[0].mxu1 }
 0x251   : > { %v860_v40 = vadd.f32 %v859_v39, %v792_v34  ;;  %v1692_v41 = vpop.f32.mrb[1].mxu0  ;;  %v1717_v42 = vpop.f32.mrb[1].mxu1  ;;  %v2485_v43 = vadd.f32 %v1565_v36, %v770_v37  ;;  %v1854_v34 = vpack.c.bf16 %v1111_v31, %v1110_v30  ;;  %v1226_v31 = vld [vmem:[%s2770_s13 + $0x20] sm:$0xff] }
 0x252   : > { %v1113_v41 = vld [vmem:[%s2766_s9 + $0x18] sm:$0xff] }
 0x253   : > { %v866_v44 = vrot.slane %v860_v40, %v865_v35  ;;  %v1112_v40 = vld [vmem:[%s2766_s9 + $0x10] sm:$0xff] }
 0x254   : > { %v1857_v42 = vpack.c.bf16 %v1113_v41, %v1112_v40  ;;  %v1230_v40 = vld [vmem:[%s2770_s13 + $0x40] sm:$0xff]  ;;  %v1232_v41 = vld [vmem:[%s2770_s13 + $0x50] sm:$0xff] }
 0x255   : > { %v867_v45 = vmul.f32 %v866_v44, %v2485_v43  ;;  %v775_v46 = vpop.f32.mrb[2].mxu0 }
 0x256   : > { %v2490_v47 = vadd.f32 %v1565_v36, %v775_v46  ;;  %v1695_v48 = vpop.f32.mrb[3].mxu0 }
 0x257   : > { %1751 = vmatmul.mubr.f32.vlgmr.msra.gmra.mrb[6].mxu0 %v867_v45  ;;  %v1115_v45 = vld [vmem:[%s2766_s9 + $0x28] sm:$0xff]  ;;  %v1116_v48 = vld [vmem:[%s2766_s9 + $0x30] sm:$0xff] }
 0x258   : > { %1753 = vmatprep.mubr.msk.f32.mxu0 %vm2124_vm2, %v2125_v38  ;;  %v868_v49 = vmul.f32 %v866_v44, %v2490_v47 }
 0x259   : > { %v780_v50 = vpop.f32.mrb[4].mxu0 }
 0x25a   : > { %v2495_v51 = vadd.f32 %v1565_v36, %v780_v50  ;;  %v1698_v52 = vpop.f32.mrb[5].mxu0  ;;  %v1118_v50 = vld [vmem:[%s2766_s9 + $0x40] sm:$0xff] }
 0x25b   : > { %1754 = vmatmul.mubr.f32.gmra.mrb[8].mxu0 %v868_v49  ;;  %v1119_v52 = vld [vmem:[%s2766_s9 + $0x48] sm:$0xff] }
 0x25c   : > { %1756 = vmatprep.mubr.msk.f32.mxu0 %vm2124_vm2, %v2125_v38  ;;  %v869_v53 = vmul.f32 %v866_v44, %v2495_v51  ;;  %v1114_v44 = vld [vmem:[%s2766_s9 + $0x20] sm:$0xff] }
 0x25d   : > { %v1860_v46 = vpack.c.bf16 %v1115_v45, %v1114_v44 }
 0x25f   : > { %1757 = vmatmul.mubr.f32.gmra.mrb[10].mxu0 %v869_v53  ;;  %v1866_v53 = vpack.c.bf16 %v1119_v52, %v1118_v50  ;;  %v1237_v50 = vld [vmem:[%s2770_s13 + $0x78] sm:$0xff] }
 0x260   : > { %1330 = vmatprep.mubr.f32.mxu0 %v2125_v38 }
 0x32a   : > { %v952_v55 = vpop.f32.mrb[6].mxu0 }
 0x32b   : > { %v1752_v56 = vpop.f32.mrb[7].mxu0  ;;  %v967_v58 = vsel %vm966_vm4, %v952_v55, -inf }
 0x32e   : > { %v957_v57 = vpop.f32.mrb[8].mxu0 }
 0x32f   : > { %v968_v59 = vsel %vm966_vm4, %v957_v57, -inf  ;;  %v1755_v60 = vpop.f32.mrb[9].mxu0 }
 0x330   : > { %v971_v61 = vmax.f32 %v967_v58, %v968_v59  ;;  %v1123_v58 = vld [vmem:[%s2766_s9 + $0x68] sm:$0xff]  ;;  %v1124_v60 = vld [vmem:[%s2766_s9 + $0x70] sm:$0xff] }
 0x332   : > { %v962_v62 = vpop.f32.mrb[10].mxu0 }
 0x333   : > { %v970_v63 = vsel %vm969_vm5, %v962_v62, -inf  ;;  %v1758_v1 = vpop.f32.mrb[11].mxu0 }
 0x334   : > { %v972_v2 = vmax.f32 %v971_v61, %v970_v63  ;;  %v1125_v61 = vld [vmem:[%s2766_s9 + $0x78] sm:$0xff] }
 0x336   : > { %v973_v3 = vrot.slane %v972_v2, 4 }
 0x338   : > { %v974_v4 = vmax.f32 %v972_v2, %v973_v3 }
 0x33a   : > { %v975_v5 = vrot.slane %v974_v4, 2 }
 0x33c   : > { %v976_v6 = vmax.f32 %v974_v4, %v975_v5 }
 0x33e   : > { %v977_v7 = vrot.slane %v976_v6, 1 }
 0x340   : > { %v978_v8 = vmax.f32 %v976_v6, %v977_v7 }
 0x342   : > { %v979_v9 = vsub.f32 %v952_v55, %v978_v8  ;;  %v980_v10 = vsub.f32 %v957_v57, %v978_v8  ;;  %v981_v11 = vsub.f32 %v962_v62, %v978_v8  ;;  %v1121_v55 = vld [vmem:[%s2766_s9 + $0x58] sm:$0xff]  ;;  %v1122_v57 = vld [vmem:[%s2766_s9 + $0x60] sm:$0xff]  ;;  %v1875_v62 = vpack.c.bf16 %v1125_v61, %v1124_v60  ;;  %v1240_v60 = vld [vmem:[%s2770_s13 + $0x90] sm:$0xff] }
 0x343   : > { %v1869_v56 = vpack.c.bf16 %v1121_v55, %v1120_v54  ;;  %v1872_v59 = vpack.c.bf16 %v1123_v58, %v1122_v57  ;;  %v1236_v54 = vld [vmem:[%s2770_s13 + $0x70] sm:$0xff]  ;;  %v1241_v57 = vld [vmem:[%s2770_s13 + $0x98] sm:$0xff] }
 0x344   : > { %v982_v12 = vmul.f32 1.442695, %v979_v9  ;;  %v984_v13 = vmul.f32 1.442695, %v980_v10  ;;  %v986_v14 = vmul.f32 1.442695, %v981_v11 }
 0x346   : > { %2004 = vpow2.f32 %v982_v12 }
 0x347   : > { %2006 = vpow2.f32 %v984_v13 }
 0x348   : > { %2008 = vpow2.f32 %v986_v14 }
 0x350   : > { %v2005_v15 = vpop.eup %2004 }
 0x351   : > { %v2007_v16 = vpop.eup %2006  ;;  %v988_v17 = vsel %vm966_vm4, %v2005_v15, 0.0 }
 0x352   : > { %v2009_v18 = vpop.eup %2008  ;;  %v989_v19 = vsel %vm966_vm4, %v2007_v16, 0.0 }
 0x353   : > { %v990_v20 = vadd.f32 %v989_v19, %v988_v17  ;;  %v991_v21 = vsel %vm969_vm5, %v2009_v18, 0.0 }
 0x355   : > { %v992_v22 = vadd.f32 %v991_v21, %v990_v20 }
 0x357   : > { %v993_v23 = vrot.slane %v992_v22, 4 }
 0x359   : > { %v994_v24 = vadd.f32 %v993_v23, %v992_v22  ;;  %v1223_v22 = vld [vmem:[%s2770_s13 + $0x8] sm:$0xff]  ;;  %v1222_v23 = vld [vmem:[%s2770_s13] sm:$0xff] }
 0x35b   : > { %v995_v25 = vrot.slane %v994_v24, 2 }
 0x35d   : > { %v996_v27 = vadd.f32 %v995_v25, %v994_v24  ;;  %v1224_v25 = vld [vmem:[%s2770_s13 + $0x10] sm:$0xff] }
 0x35f   : > { %v997_v28 = vrot.slane %v996_v27, 1 }
 0x361   : > { %v998_v29 = vadd.f32 %v997_v28, %v996_v27  ;;  %v1227_v27 = vld [vmem:[%s2770_s13 + $0x28] sm:$0xff]  ;;  %v1229_v28 = vld [vmem:[%s2770_s13 + $0x38] sm:$0xff] }
 0x362   : > { %v1881_v30 = vpack.c.bf16 %v1229_v28, %v1227_v27  ;;  %v1354_v27 = vld [vmem:[#allocation2 + $0x8] sm:$0xff] }
 0x363   : > { %2010 = vrcp.f32 %v998_v29  ;;  %v1879_v29 = vpack.c.bf16 %v1224_v25, %v1222_v23  ;;  %v1370_v23 = vld [vmem:[#allocation2 + $0x88] sm:$0xff]  ;;  %v1353_v25 = vld [vmem:[#allocation2] sm:$0xff] }
 0x364   : > { %v1911_v28 = vpack.c.bf16 %v1354_v27, %v1353_v25 }
 0x36d   : > { %v2011_v32 = vpop.eup %2010 }
 0x36e   : > { %v1000_v36 = vmul.f32 %v2011_v32, %v2005_v15  ;;  %v1001_v37 = vmul.f32 %v2011_v32, %v2007_v16  ;;  %v1002_v39 = vmul.f32 %v2011_v32, %v2009_v18  ;;  %v1228_v32 = vld [vmem:[%s2770_s13 + $0x30] sm:$0xff] }
 0x370   : > { %1762 = vmatmul.mubr.msk.f32.vlgmr.msra.gmra.mrb[2].mxu1 %vm966_vm4, %v1000_v36  ;;  %v1233_v36 = vld [vmem:[%s2770_s13 + $0x58] sm:$0xff] }
 0x371   : > { %1764 = vmatprep.mubr.msk.f32.mxu1 %vm2124_vm2, %v2125_v38  ;;  %1855 = vmatpush3.bf16.msra.mxu1 %v1854_v34  ;;  %v1231_v34 = vld [vmem:[%s2770_s13 + $0x48] sm:$0xff] }
 0x372   : > { %1856 = vmatprep.subr.bf16.mxu1 %v2123_v26 }
 0x374   : > { %1765 = vmatmul.mubr.msk.f32.gmra.mrb[4].mxu1 %vm966_vm4, %v1001_v37  ;;  %v1883_v37 = vpack.c.bf16 %v1228_v32, %v1226_v31  ;;  %v1355_v32 = vld [vmem:[#allocation2 + $0x10] sm:$0xff] }
 0x375   : > { %1767 = vmatprep.mubr.msk.f32.mxu1 %vm2124_vm2, %v2125_v38  ;;  %1858 = vmatpush3.bf16.msra.mxu1 %v1857_v42  ;;  %v1887_v42 = vpack.c.bf16 %v1232_v41, %v1230_v40  ;;  %v1357_v41 = vld [vmem:[#allocation2 + $0x20] sm:$0xff] }
 0x376   : > { %1859 = vmatprep.subr.bf16.mxu1 %v2123_v26 }
 0x378   : > { %1768 = vmatmul.mubr.msk.f32.gmra.mrb[6].mxu1 %vm966_vm4, %v1002_v39  ;;  %v1885_v39 = vpack.c.bf16 %v1233_v36, %v1231_v34  ;;  %v1356_v34 = vld [vmem:[#allocation2 + $0x18] sm:$0xff] }
 0x379   : > { %1802 = vmatprep.mubr.msk.f32.mxu1 %vm2124_vm2, %v2125_v38  ;;  %1861 = vmatpush3.bf16.msra.mxu1 %v1860_v46  ;;  %v1117_v38 = vld [vmem:[%s2766_s9 + $0x38] sm:$0xff]  ;;  %v1915_v36 = vpack.c.bf16 %v1356_v34, %v1355_v32 }
 0x37a   : > { %1862 = vmatprep.subr.bf16.mxu1 %v2123_v26  ;;  %v1863_v49 = vpack.c.bf16 %v1117_v38, %v1116_v48 }
 0x37d   : > { %1864 = vmatpush3.bf16.msra.mxu1 %v1863_v49  ;;  %v1235_v49 = vld [vmem:[%s2770_s13 + $0x68] sm:$0xff] }
 0x37e   : > { %1865 = vmatprep.subr.bf16.mxu1 %v2123_v26  ;;  %v1889_v52 = vpack.c.bf16 %v1237_v50, %v1235_v49  ;;  %v1360_v49 = vld [vmem:[#allocation2 + $0x38] sm:$0xff] }
 0x381   : > { %1867 = vmatpush3.bf16.msra.mxu1 %v1866_v53  ;;  %v1234_v53 = vld [vmem:[%s2770_s13 + $0x60] sm:$0xff] }
 0x382   : > { %1868 = vmatprep.subr.bf16.mxu1 %v2123_v26  ;;  %v1891_v55 = vpack.c.bf16 %v1236_v54, %v1234_v53  ;;  %v1378_v53 = vld [vmem:[#allocation2 + $0xc8] sm:$0xff] }
 0x385   : > { %1870 = vmatpush3.bf16.msra.mxu1 %v1869_v56  ;;  %v1239_v56 = vld [vmem:[%s2770_s13 + $0x88] sm:$0xff] }
 0x386   : > { %1871 = vmatprep.subr.bf16.mxu1 %v2123_v26  ;;  %v1893_v58 = vpack.c.bf16 %v1241_v57, %v1239_v56  ;;  %v1362_v56 = vld [vmem:[#allocation2 + $0x48] sm:$0xff] }
 0x389   : > { %1873 = vmatpush3.bf16.msra.mxu1 %v1872_v59  ;;  %v1238_v59 = vld [vmem:[%s2770_s13 + $0x80] sm:$0xff] }
 0x38a   : > { %1874 = vmatprep.subr.bf16.mxu1 %v2123_v26  ;;  %v1895_v61 = vpack.c.bf16 %v1240_v60, %v1238_v59  ;;  %v1380_v59 = vld [vmem:[#allocation2 + $0xd8] sm:$0xff] }
 0x38d   : > { %1876 = vmatpush3.bf16.msra.mxu1 %v1875_v62  ;;  %v1243_v62 = vld [vmem:[%s2770_s13 + $0xa8] sm:$0xff] }
 0x443   : > { %v1083_v63 = vpop.f32.mrb[2].mxu1 }
 0x444   : > { %v1763_v1 = vpop.f32.mrb[3].mxu1  ;;  %v1097_v3 = vmul.f32 %v1083_v63, %v2485_v43  ;;  %v1245_v63 = vld [vmem:[%s2770_s13 + $0xb8] sm:$0xff] }
 0x445   : > { %v1897_v1 = vpack.c.bf16 %v1245_v63, %v1243_v62  ;;  %v1364_v62 = vld [vmem:[#allocation2 + $0x58] sm:$0xff] }
 0x447   : > { %v1088_v2 = vpop.f32.mrb[4].mxu1 }
 0x448   : > { %v1098_v4 = vmul.f32 %v1088_v2, %v2490_v47  ;;  %v1766_v5 = vpop.f32.mrb[5].mxu1  ;;  %v1197_v47 = vld [vmem:[%s2767_s10] sm:$0x1] }
 0x449   : > { %v1242_v2 = vld [vmem:[%s2770_s13 + $0xa0] sm:$0xff]  ;;  %v1247_v5 = vld [vmem:[%s2770_s13 + $0xc8] sm:$0xff] }
 0x44a   : > { %v1100_v6 = vadd.f32 %v1098_v4, %v1097_v3  ;;  %v1244_v3 = vld [vmem:[%s2770_s13 + $0xb0] sm:$0xff] }
 0x44b   : > { %v1093_v26 = vpop.f32.mrb[6].mxu1  ;;  %v1899_v4 = vpack.c.bf16 %v1244_v3, %v1242_v2  ;;  %v1382_v2 = vld [vmem:[#allocation2 + $0xe8] sm:$0xff] }
 0x44c   : > { %v1099_v7 = vmul.f32 %v1093_v26, %v2495_v51  ;;  %v1769_v8 = vpop.f32.mrb[7].mxu1 }
 0x44d   : > { %v1248_v8 = vld [vmem:[%s2770_s13 + $0xd0] sm:$0xff] }
 0x44e   : > { %v1102_v9 = vsel %vm1101_vm6, %v1099_v7, 0.0  ;;  %v1246_v7 = vld [vmem:[%s2770_s13 + $0xc0] sm:$0xff] }
 0x44f   : > { %v1103_v10 = vadd.f32 %v1102_v9, %v1100_v6  ;;  %v1249_v6 = vld [vmem:[%s2770_s13 + $0xd8] sm:$0xff]  ;;  %v1903_v9 = vpack.c.bf16 %v1248_v8, %v1246_v7  ;;  %v1384_v7 = vld [vmem:[#allocation2 + $0xf8] sm:$0xff] }
 0x450   : > { %v1901_v26 = vpack.c.bf16 %v1249_v6, %v1247_v5  ;;  %v1366_v5 = vld [vmem:[#allocation2 + $0x68] sm:$0xff] }
 0x451   : > { %v1104_v11 = vrot.slane %v1103_v10, 4 }
 0x453   : > { %v1105_v12 = vadd.f32 %v1104_v11, %v1103_v10  ;;  %v1251_v10 = vld [vmem:[%s2770_s13 + $0xe8] sm:$0xff]  ;;  %v1253_v11 = vld [vmem:[%s2770_s13 + $0xf8] sm:$0xff] }
 0x455   : > { %v1106_v13 = vrot.slane %v1105_v12, 2 }
 0x457   : > { %v1107_v14 = vadd.f32 %v1106_v13, %v1105_v12  ;;  %v1250_v12 = vld [vmem:[%s2770_s13 + $0xe0] sm:$0xff]  ;;  %v1905_v13 = vpack.c.bf16 %v1253_v11, %v1251_v10  ;;  %v1368_v10 = vld [vmem:[#allocation2 + $0x78] sm:$0xff] }
 0x459   : > { %v1108_v15 = vrot.slane %v1107_v14, 1 }
 0x45b   : > { %v1109_v16 = vadd.f32 %v1108_v15, %v1107_v14  ;;  %v1252_v14 = vld [vmem:[%s2770_s13 + $0xf0] sm:$0xff] }
 0x45c   : > { %v1907_v15 = vpack.c.bf16 %v1252_v14, %v1250_v12  ;;  %v1254_v12 = vld [vmem:[%s2771_s14] sm:$0x3] }
 0x45d   : > { %1803 = vmatmul.mubr.f32.vlgmr.msra.gmra.mrb[8].mxu1 %v1109_v16  ;;  %v1259_v14 = vrot.slane %v1254_v12, %v865_v35 }
 0x530   : > { %v1192_v43 = vpop.f32.mrb[8].mxu1 }
 0x531   : > { %v1196_v17 = vadd.f32 %v1192_v43, %v2316_v0  ;;  %v1804_v18 = vpop.f32.mrb[9].mxu1  ;;  %v1225_v0 = vld [vmem:[%s2770_s13 + $0x18] sm:$0xff] }
 0x532   : > { %v1877_v24 = vpack.c.bf16 %v1225_v0, %v1223_v22  ;;  %v1204_v18 = vld [vmem:[%s2768_s11] sm:$0x1]  ;;  %v1369_v0 = vld [vmem:[#allocation2 + $0x80] sm:$0xff] }
 0x533   : > { %v1198_v51 = vadd.f32 %v1197_v47, %v1196_v17 }
 0x534   : > { %1878 = vmatprep.subr.bf16.mxu0 %v1877_v24  ;;  %v1909_v24 = vpack.c.bf16 %v1370_v23, %v1369_v0 }
 0x535   : > { %1200 = vrot.lane.b32.xlu0 %v1198_v51, %s2126_s27  ;;  %1880 = vmatpush1.bf16.msra.mxu0 %v1879_v29  ;;  %v1371_v29 = vld [vmem:[#allocation2 + $0x90] sm:$0xff]  ;;  %s2058_s27 = scalar_lea.vmem %s2057_s4, 32 }
 0x536   : > { %1882 = vmatprep.subr.bf16.mxu0 %v1881_v30  ;;  %1910 = vmatprep.subr.bf16.mxu1 %v1909_v24  ;;  %v1372_v30 = vld [vmem:[#allocation2 + $0x98] sm:$0xff]  ;;  %p2060_p3 = scmp.lt.s32.totalorder %s2058_s27, %s2052_s29 }
 0x537   : > { %1912 = vmatpush3.bf16.msra.mxu1 %v1911_v28  ;;  %v1913_v31 = vpack.c.bf16 %v1372_v30, %v1371_v29 }
 0x538   : > { %p2061_p4 = por %p2060_p3, %p2059_p2 }
 0x539   : > { %1884 = vmatpush1.bf16.msra.mxu0 %v1883_v37  ;;  %1914 = vmatprep.subr.bf16.mxu1 %v1913_v31  ;;  %v1373_v37 = vld [vmem:[#allocation2 + $0xa0] sm:$0xff]  ;;  %v1456_v31 = vld [vmem:[%s2773_s16] sm:$0x1] }
 0x53a   : > { %1886 = vmatprep.subr.bf16.mxu0 %v1885_v39  ;;  %v1374_v39 = vld [vmem:[#allocation2 + $0xa8] sm:$0xff]  ;;  %p2062_p7 = pnand %p2061_p4, %p2055_p12 }
 0x53b   : > { %1916 = vmatpush3.bf16.msra.mxu1 %v1915_v36  ;;  %v1917_v40 = vpack.c.bf16 %v1374_v39, %v1373_v37 }
 0x53d   : > { %1888 = vmatpush1.bf16.msra.mxu0 %v1887_v42  ;;  %v1358_v42 = vld [vmem:[#allocation2 + $0x28] sm:$0xff]  ;;  %1918 = vmatprep.subr.bf16.mxu1 %v1917_v40 }
 0x53e   : > { %1890 = vmatprep.subr.bf16.mxu0 %v1889_v52  ;;  %v1377_v52 = vld [vmem:[#allocation2 + $0xc0] sm:$0xff] }
 0x53f   : > { %v1925_v54 = vpack.c.bf16 %v1378_v53, %v1377_v52 }
 0x541   : > { %1892 = vmatpush1.bf16.msra.mxu0 %v1891_v55  ;;  %v1361_v55 = vld [vmem:[#allocation2 + $0x40] sm:$0xff] }
 0x542   : > { %1894 = vmatprep.subr.bf16.mxu0 %v1893_v58  ;;  %v1927_v57 = vpack.c.bf16 %v1362_v56, %v1361_v55  ;;  %v1379_v58 = vld [vmem:[#allocation2 + $0xd0] sm:$0xff] }
 0x543   : > { %v1929_v60 = vpack.c.bf16 %v1380_v59, %v1379_v58 }
 0x545   : > { %1896 = vmatpush1.bf16.msra.mxu0 %v1895_v61  ;;  %v1363_v61 = vld [vmem:[#allocation2 + $0x50] sm:$0xff] }
 0x546   : > { %1898 = vmatprep.subr.bf16.mxu0 %v1897_v1  ;;  %v1931_v63 = vpack.c.bf16 %v1364_v62, %v1363_v61  ;;  %v1381_v1 = vld [vmem:[#allocation2 + $0xe0] sm:$0xff] }
 0x547   : > { %v1933_v3 = vpack.c.bf16 %v1382_v2, %v1381_v1 }
 0x549   : > { %1900 = vmatpush1.bf16.msra.mxu0 %v1899_v4  ;;  %v1365_v4 = vld [vmem:[#allocation2 + $0x60] sm:$0xff] }
 0x54a   : > { %1902 = vmatprep.subr.bf16.mxu0 %v1901_v26  ;;  %v1935_v6 = vpack.c.bf16 %v1366_v5, %v1365_v4  ;;  %v1383_v26 = vld [vmem:[#allocation2 + $0xf0] sm:$0xff] }
 0x54b   : > { %v1937_v8 = vpack.c.bf16 %v1384_v7, %v1383_v26 }
 0x54d   : > { %1904 = vmatpush1.bf16.msra.mxu0 %v1903_v9  ;;  %v1367_v9 = vld [vmem:[#allocation2 + $0x70] sm:$0xff] }
 0x54e   : > { %1906 = vmatprep.subr.bf16.mxu0 %v1905_v13  ;;  %v1939_v11 = vpack.c.bf16 %v1368_v10, %v1367_v9  ;;  %v1262_v13 = vsub.s32 1, %v2476_v33 }
 0x551   : > { %1908 = vmatpush1.bf16.msra.mxu0 %v1907_v15  ;;  %v1263_v15 = vrot.slane %v1254_v12, %v1262_v13 }
 0x5a7   : > { %v1201_v19 = vpop.permute.xlu0 %1200 }
 0x5a8   : > { %v2584_v20 = vsel %vm620_vm0, %v1198_v51, %v1201_v19  ;;  %v1205_v19 = vld [vmem:[%s2769_s12] sm:$0x1] }
 0x5a9   : > { %v1206_v21 = vsel %vm1101_vm6, %v2584_v20, 0.0 }
 0x5aa   : > { %1207 = vadd.xlane.f32.xlu1 %v1206_v21 }
 0x637   : > { %v1208_v44 = vpop.xlane.xlu1 %1207 }
 0x638   : > { %v1210_v45 = vmul.f32 0.0078125, %v1208_v44  ;;  %v1919_v44 = vpack.c.bf16 %v1358_v42, %v1357_v41 }
 0x63a   : > { %v1211_v46 = vsub.f32 %v2584_v20, %v1210_v45  ;;  %1920 = vmatpush3.bf16.msra.mxu1 %v1919_v44  ;;  %v1375_v45 = vld [vmem:[#allocation2 + $0xb0] sm:$0xff] }
 0x63c   : > { %v1212_v48 = vmul.f32 %v1211_v46, %v1211_v46 }
 0x63e   : > { %v1213_v38 = vsel %vm1101_vm6, %v1212_v48, 0.0 }
 0x63f   : > { %1214 = vadd.xlane.f32.xlu1 %v1213_v38  ;;  %v1359_v38 = vld [vmem:[#allocation2 + $0x30] sm:$0xff] }
 0x640   : > { %v1923_v50 = vpack.c.bf16 %v1360_v49, %v1359_v38  ;;  %v1459_v49 = vld [vmem:[%s2775_s18] sm:$0x1] }
 0x6cc   : > { %v1215_v16 = vpop.xlane.xlu1 %1214 }
 0x6cd   : > { %v1216_v43 = vmul.f32 0.0078125, %v1215_v16 }
 0x6cf   : > { %v1217_v47 = vadd.f32 1e-05, %v1216_v43 }
 0x6d1   : > { %2012 = vrsqrt.f32 %v1217_v47 }
 0x6db   : > { %v2013_v17 = vpop.eup %2012 }
 0x6dc   : > { %v1219_v51 = vmul.f32 %v2013_v17, %v1211_v46  ;;  %v1376_v46 = vld [vmem:[#allocation2 + $0xb8] sm:$0xff] }
 0x6dd   : > { %v1921_v48 = vpack.c.bf16 %v1376_v46, %v1375_v45 }
 0x6de   : > { %v1220_v21 = vmul.f32 %v1219_v51, %v1204_v18 }
 0x6df   : > { %1922 = vmatprep.subr.bf16.mxu1 %v1921_v48 }
 0x6e0   : > { %v1221_v22 = vadd.f32 %v1220_v21, %v1205_v19  ;;  %1924 = vmatpush3.bf16.msra.mxu1 %v1923_v50 }
 0x6e1   : > { %1926 = vmatprep.subr.bf16.mxu1 %v1925_v54 }
 0x6e2   : > { %1331 = vmatmul.mubr.f32.vlgmr.msra.gmra.mrb[12].mxu0 %v1221_v22 }
 0x6e4   : > { %1928 = vmatpush3.bf16.msra.mxu1 %v1927_v57 }
 0x6e5   : > { %1930 = vmatprep.subr.bf16.mxu1 %v1929_v60 }
 0x6e8   : > { %1932 = vmatpush3.bf16.msra.mxu1 %v1931_v63 }
 0x6e9   : > { %1934 = vmatprep.subr.bf16.mxu1 %v1933_v3 }
 0x6ec   : > { %1936 = vmatpush3.bf16.msra.mxu1 %v1935_v6 }
 0x6ed   : > { %1938 = vmatprep.subr.bf16.mxu1 %v1937_v8 }
 0x6f0   : > { %1940 = vmatpush3.bf16.msra.mxu1 %v1939_v11 }
 0x7b5   : > { %v1332_v16 = vpop.f32.mrb[12].mxu0 }
 0x7b6   : > { %v1333_v43 = vadd.f32 %v1332_v16, %v1259_v14  ;;  %v1334_v47 = vpop.f32.mrb[13].mxu0 }
 0x7b7   : > { %v1335_v17 = vadd.f32 %v1334_v47, %v1263_v15 }
 0x7b8   : > { %v1574_v18 = vmul.f32 -1.702, %v1333_v43 }
 0x7b9   : > { %v1575_v51 = vmul.f32 -1.702, %v1335_v17 }
 0x7ba   : > { %v1341_v19 = vmul.f32 1.442695, %v1574_v18 }
 0x7bb   : > { %v1343_v21 = vmul.f32 1.442695, %v1575_v51 }
 0x7bc   : > { %2014 = vpow2.f32 %v1341_v19 }
 0x7bd   : > { %2016 = vpow2.f32 %v1343_v21 }
 0x7c6   : > { %v2015_v22 = vpop.eup %2014 }
 0x7c7   : > { %v2017_v0 = vpop.eup %2016  ;;  %v1345_v23 = vadd.f32 1.0, %v2015_v22 }
 0x7c8   : > { %v1346_v24 = vadd.f32 1.0, %v2017_v0 }
 0x7c9   : > { %2018 = vrcp.f32 %v1345_v23 }
 0x7ca   : > { %2020 = vrcp.f32 %v1346_v24 }
 0x7d3   : > { %v2019_v25 = vpop.eup %2018 }
 0x7d4   : > { %v2021_v33 = vpop.eup %2020  ;;  %v1351_v27 = vmul.f32 %v2019_v25, %v1333_v43 }
 0x7d5   : > { %v1352_v35 = vmul.f32 %v2021_v33, %v1335_v17 }
 0x7d7   : > { %1449 = vmatprep.mubr.f32.mxu1 %v1352_v35 }
 0x7d8   : > { %1450 = vmatmul.mubr.f32.vlgmr.msra.gmra.mrb[10].mxu1 %v1351_v27 }
 0x8ab   : > { %v1671_v28 = vpop.f32.mrb[10].mxu1 }
 0x8ac   : > { %v1672_v29 = vpop.f32.mrb[11].mxu1 }
 0x8ad   : > { %v1673_v30 = vadd.f32 %v1672_v29, %v1671_v28 }
 0x8af   : > { %v1455_v32 = vadd.f32 %v1673_v30, %v2584_v20  ;;  %v1458_v20 = vld [vmem:[%s2774_s17] sm:$0x1] }
 0x8b1   : > { %v1457_v34 = vadd.f32 %v1456_v31, %v1455_v32 }
 0x8b3   : > { %v1460_v36 = vsel %vm1101_vm6, %v1457_v34, 0.0 }
 0x8b4   : > { %1461 = vadd.xlane.f32.xlu1 %v1460_v36 }
 0x941   : > { %v1462_v37 = vpop.xlane.xlu1 %1461 }
 0x942   : > { %v1463_v39 = vmul.f32 0.0078125, %v1462_v37 }
 0x944   : > { %v1464_v40 = vsub.f32 %v1457_v34, %v1463_v39 }
 0x946   : > { %v1465_v41 = vmul.f32 %v1464_v40, %v1464_v40 }
 0x948   : > { %v1466_v42 = vsel %vm1101_vm6, %v1465_v41, 0.0 }
 0x949   : > { %1467 = vadd.xlane.f32.xlu1 %v1466_v42 }
 0x9d6   : > { %v1468_v44 = vpop.xlane.xlu1 %1467 }
 0x9d7   : > { %v1469_v45 = vmul.f32 0.0078125, %v1468_v44 }
 0x9d9   : > { %v1470_v46 = vadd.f32 1e-05, %v1469_v45 }
 0x9db   : > { %2022 = vrsqrt.f32 %v1470_v46 }
 0x9e5   : > { %v2023_v48 = vpop.eup %2022 }
 0x9e6   : > { %v1472_v38 = vmul.f32 %v2023_v48, %v1464_v40 }
 0x9e8   : > { %v1473_v50 = vmul.f32 %v1472_v38, %v1458_v20 }
 0x9ea   : > { %v1474_v52 = vadd.f32 %v1473_v50, %v1459_v49 }
 0x9ec   : > { %1475 = vst [vmem:[%s609_s2] sm:$0x1] %v1474_v52 }
 0x9ed   : > { %2065 = shalt.err (!%p2062_p7)
}
 0x9ee   : > { %s2066_s22 = scalar_lea.hbm %s2715_s26, 16  ;;  %s2070_s24 = scalar_lea.hbm %s2776_s19, 32 }
 0x9ef   : > { %p2067_p8 = scmp.ne.s32.totalorder %s2715_s26, %s2066_s22  ;;  %p2071_p1 = scmp.lt.u32.totalorder %s2715_s26, %s2776_s19 }
 0x9f0   : > { %p2072_p0 = scmp.lt.u32.totalorder %s2070_s24, %s2066_s22  ;;  %p2074_p6 = scmp.lt.u32.totalorder %s2066_s22, %s2715_s26 }
 0x9f1   : > { %p2068_p11 = pnand %p2067_p8, %p2808_p9 }
 0x9f2   : > { %p2073_p5 = por %p2072_p0, %p2071_p1 }
 0x9f3   : > { %p2069_p13 = pneg %p2068_p11 }
 0x9f4   : > { %p2075_p10 = por %p2074_p6, %p2073_p5 }
 0x9f6   : > { %p2076_p12 = pnand %p2075_p10, %p2069_p13 }
 0x9f8   : > { %2079 = shalt.err (!%p2076_p12)
}
 0x9f9   : > { %1946 = dma.vmem_to_hbm [thread:$0]  (%p2808_p9), %s2717_s23, 16, %s2715_s26, %s1477_s28  }
 0x9fa PF: > { %s2809_s29 = sld [smem:[#allocation8_spill]]  ;;  %s2810_s4 = sld [smem:[#allocation12_spill]] }
 0x9fb   : > { %p1958_p2 = scmp.ge.s32.totalorder %s2118_s21, 2 }
 0xa00   : > { %s1501_s27 = sand.u32 1, %s2809_s29   ;;  %p2811_p3 = scmp.ne.s32.totalorder %s2810_s4, 0 }
 0xa01   : > { %s1502_s20 = scalar_lea.sflag [#allocation4], %s1501_s27 }
 0xa02   : > { %p1953_p4 = pnand %p1958_p2, %p2811_p3 }
 0xa04   : > { %2101 = dma.done.wait (!%p1953_p4), %s1502_s20, 16  }
 0xa05   : > { %2103 = vsyncadd (!%p1953_p4), %s1502_s20, 4294967280  ;;  %s2812_s21 = sld [smem:[#allocation10_spill]]  ;;  %s2813_s22 = sld [smem:[#allocation9_spill]] }
 0xa06   : > { %s2814_s20 = sld [smem:[#allocation11_spill]]  ;;  %s2815_s0 = smov %s2110_s30 }
 0xa0b   : > { %p30_p7 = scmp.ge.s32.totalorder %s2812_s21, 4   ;;  %s2816_s30 = smov %s2813_s22 }
 0xa0d   :  { %32 = sbr.rel (!%p30_p7) target bundleno = 10 (0xa), region = 136 }
 0xa14   :  { %1506 = vsyncpa [#allocation3], 1 }
 0xa15   :  { %1508 = vsyncpa [#allocation3 + $0x1], 1 }
 0xa16   :  { %1509 = vsyncpa [#allocation4], 1 }
 0xa17   :  { %1511 = vsyncpa [#allocation4 + $0x1], 1 }

</bundles_post_ra>
